<compile_context>
chip_gen: v7x
topology: tpu7x:2x2x1
jax: 0.10.0
libtpu: 0.0.40
codegen_flags: <defaults>
</compile_context>

<pallas_src>
import functools

import jax
import jax.numpy as jnp
from jax.experimental import pallas as pl
from jax.experimental.pallas import tpu as pltpu


# ----------------------------------------------------------------------------
# Static problem dimensions (from the PyTorch module).
# ----------------------------------------------------------------------------
IMG = 28
KH = KW = 13
OH = OW = 16                  # 28 - 13 + 1
P = OH * OW                   # 256 spatial positions per image
KDIM = KH * KW                # 169 im2col patch length (NOT padded in HBM)
C_OUT = 63                    # conv output channels
CPAD = 64                     # padded conv channels (sublane-aligned)
FEAT = CPAD * P               # 16384 padded flattened features
H1 = 80
H2 = 15
NCLS = 10
K_TILE = 8192                 # reduction tile for the 16384->80 Linear
assert FEAT % K_TILE == 0


# ----------------------------------------------------------------------------
# Kernel 1: conv-as-matmul, transposed orientation:  Wc(64,169) @ patchesT
# Output block per image is (64, 256): lane-dense stores, full MXU N width.
# ----------------------------------------------------------------------------
def _conv_relu_kernel(r_imgs, p_ref, wc_ref, out_ref):
    # p_ref: (R, KDIM, P); wc_ref: (CPAD, KDIM); out_ref: (R, CPAD, P)
    w = wc_ref[...]
    for r in range(r_imgs):                      # small static unroll
        out_ref[r] = jnp.maximum(
            jnp.dot(w, p_ref[r], preferred_element_type=jnp.float32), 0.0)


def _pick_conv_rows(batch):
    # Biggest image-block that still leaves >= 2 grid steps (v7x 2-TC split).
    for r in (8, 4, 2):
        if batch % r == 0 and (batch // r) >= 2:
            return r
    return 1


def conv_relu(patches_t, wc_p):
    # patches_t: (B, KDIM, P) f32; wc_p: (CPAD, KDIM) f32 -> (B, CPAD, P) f32
    B = patches_t.shape[0]
    R = _pick_conv_rows(B)
    assert B % R == 0
    return pl.pallas_call(
        functools.partial(_conv_relu_kernel, R),
        out_shape=jax.ShapeDtypeStruct((B, CPAD, P), jnp.float32),
        grid=(B // R,),
        in_specs=[
            pl.BlockSpec((R, KDIM, P), lambda i: (i, 0, 0)),
            pl.BlockSpec((CPAD, KDIM), lambda i: (0, 0)),
        ],
        out_specs=pl.BlockSpec((R, CPAD, P), lambda i: (i, 0, 0)),
        compiler_params=pltpu.CompilerParams(
            dimension_semantics=("parallel",)),
    )(patches_t, wc_p)


# ----------------------------------------------------------------------------
# Kernel 2: K-tiled big Linear (bf16 weights, f32 accum) + fused
#           (Linear -> ReLU -> Linear -> LogSoftmax) epilogue.
# ----------------------------------------------------------------------------
def _mlp_head_kernel(feat_ref, w2_ref, w3_ref, w5_ref, out_ref, acc_ref):
    # feat_ref: (B, K_TILE) f32; w2_ref: (K_TILE, 80) bf16; w3_ref: (80, 15);
    # w5_ref: (15, 10); out_ref: (B, 10); acc_ref: (B, 80) f32 scratch.
    k = pl.program_id(0)

    @pl.when(k == 0)
    def _():
        acc_ref[...] = jnp.zeros_like(acc_ref)

    acc_ref[...] += jnp.dot(feat_ref[...], w2_ref[...].astype(jnp.float32),
                            preferred_element_type=jnp.float32)

    @pl.when(k == pl.num_programs(0) - 1)
    def _():
        h = jnp.dot(acc_ref[...], w3_ref[...],
                    preferred_element_type=jnp.float32)
        h = jnp.maximum(h, 0.0)
        logits = jnp.dot(h, w5_ref[...], preferred_element_type=jnp.float32)
        # LogSoftmax over dim=1 (max-stabilized), all in f32.
        m = jnp.max(logits, axis=-1, keepdims=True)
        z = logits - m
        lse = jnp.log(jnp.sum(jnp.exp(z), axis=-1, keepdims=True))
        out_ref[...] = z - lse


def mlp_head(feat, w2_p, w3_p, w5_p):
    B = feat.shape[0]
    n_k = FEAT // K_TILE          # = 2 grid steps
    return pl.pallas_call(
        _mlp_head_kernel,
        out_shape=jax.ShapeDtypeStruct((B, NCLS), jnp.float32),
        grid_spec=pltpu.PrefetchScalarGridSpec(
            num_scalar_prefetch=0,
            grid=(n_k,),
            in_specs=[
                pl.BlockSpec((B, K_TILE), lambda k: (0, k)),
                pl.BlockSpec((K_TILE, H1), lambda k: (k, 0)),
                pl.BlockSpec((H1, H2), lambda k: (0, 0)),
                pl.BlockSpec((H2, NCLS), lambda k: (0, 0)),
            ],
            out_specs=pl.BlockSpec((B, NCLS), lambda k: (0, 0)),
            scratch_shapes=[pltpu.VMEM((B, H1), jnp.float32)],
        ),
        compiler_params=pltpu.CompilerParams(
            dimension_semantics=("arbitrary",)),
    )(feat, w2_p, w3_p, w5_p)


# ----------------------------------------------------------------------------
# One-time parameter preparation (hoisted out of the per-call forward).
# ----------------------------------------------------------------------------
def prepare_params(wc, w2, w3, w5):
    # wc: (63,1,13,13); w2: (80,16128); w3: (15,80); w5: (10,15)
    wc_p = jnp.zeros((CPAD, KDIM), jnp.float32)
    wc_p = wc_p.at[:C_OUT, :].set(wc.reshape(C_OUT, KDIM).astype(jnp.float32))

    # PyTorch feature index f = c*256 + p == our row-major (B,64,256) flatten,
    # so w2 keeps its original row order; only zero-pad the channel axis.
    w2_t = w2.T.astype(jnp.float32)                       # (16128, 80)
    w2_r = w2_t.reshape(C_OUT, P, H1)                     # [c, p, o]
    w2_r = jnp.pad(w2_r, ((0, CPAD - C_OUT), (0, 0), (0, 0)))
    w2_p = w2_r.reshape(FEAT, H1).astype(jnp.bfloat16)    # (16384, 80) bf16

    w3_p = w3.T.astype(jnp.float32)                       # (80, 15)
    w5_p = w5.T.astype(jnp.float32)                       # (15, 10)
    return wc_p, w2_p, w3_p, w5_p


# ----------------------------------------------------------------------------
# Per-call glue: transposed im2col (no K padding) and the full forward.
# ----------------------------------------------------------------------------
def im2col_t(x):
    # x: (B, 28, 28) -> (B, 169, 256); patch axis ordered (kh, kw),
    # spatial axis ordered (oh, ow) row-major (matches NCHW conv output).
    B = x.shape[0]
    cols = []
    for kh in range(KH):
        for kw in range(KW):
            cols.append(x[:, kh:kh + OH, kw:kw + OW].reshape(B, P))
    return jnp.stack(cols, axis=1)


@jax.jit
def forward(x, wc_p, w2_p, w3_p, w5_p):
    B = x.shape[0]
    x = x.reshape(B, IMG, IMG).astype(jnp.float32)
    patches_t = im2col_t(x)                  # (B, 169, 256)
    conv = conv_relu(patches_t, wc_p)        # (B, 64, 256)
    feat = conv.reshape(B, FEAT)             # free reshape: c*256+p == NCHW order
    return mlp_head(feat, w2_p, w3_p, w5_p)  # (B, 10)


# ----------------------------------------------------------------------------
# Pure-JAX reference (matches PyTorch semantics exactly, original weights).
# ----------------------------------------------------------------------------
@jax.jit
def reference_forward(x, wc, w2, w3, w5):
    B = x.shape[0]
    x = x.reshape(B, 1, IMG, IMG).astype(jnp.float32)
    conv = jax.lax.conv_general_dilated(
        x, wc.astype(jnp.float32), window_strides=(1, 1), padding="VALID",
        dimension_numbers=("NCHW", "OIHW", "NCHW"))       # (B,63,16,16)
    conv = jnp.maximum(conv, 0.0)
    feat = conv.reshape(B, C_OUT * P)                     # NCHW flatten
    h = feat @ w2.T
    h = h @ w3.T
    h = jnp.maximum(h, 0.0)
    logits = h @ w5.T
    return jax.nn.log_softmax(logits, axis=-1)


if __name__ == "__main__":
    key = jax.random.PRNGKey(0)
    k_x, k_wc, k_w2, k_w3, k_w5 = jax.random.split(key, 5)

    B = 2
    x = jax.random.normal(k_x, (B, 1, IMG, IMG), dtype=jnp.float32)

    # Deterministic parameter init (kaiming-uniform-ish scale, PyTorch shapes).
    wc = jax.random.uniform(k_wc, (C_OUT, 1, KH, KW), jnp.float32,
                            -1.0 / 13.0, 1.0 / 13.0)
    w2 = jax.random.uniform(k_w2, (H1, C_OUT * P), jnp.float32,
                            -1.0 / (16128 ** 0.5), 1.0 / (16128 ** 0.5))
    w3 = jax.random.uniform(k_w3, (H2, H1), jnp.float32,
                            -1.0 / (80 ** 0.5), 1.0 / (80 ** 0.5))
    w5 = jax.random.uniform(k_w5, (NCLS, H2), jnp.float32,
                            -1.0 / (15 ** 0.5), 1.0 / (15 ** 0.5))

    # One-time weight prep (permutation/padding/bf16 cast hoisted out of forward).
    wc_p, w2_p, w3_p, w5_p = prepare_params(wc, w2, w3, w5)

    out = jax.block_until_ready(forward(x, wc_p, w2_p, w3_p, w5_p))
    ref = jax.block_until_ready(reference_forward(x, wc, w2, w3, w5))

    assert out.shape == (B, NCLS)
    # Tolerance loosened vs the all-f32 version: w2 is streamed as bf16.
    assert jnp.allclose(out, ref, atol=1e-2, rtol=1e-2), (
        f"mismatch: max abs diff {jnp.max(jnp.abs(out - ref))}")

    print("KERNEL_OK")
</pallas_src>

<mosaic_0001>
module attributes {stable_mosaic.version = 11 : i64} {
  func.func @_conv_relu_kernel(%arg0: i32, %arg1: memref<1x169x256xf32, #tpu.memory_space<vmem>>, %arg2: memref<64x169xf32, #tpu.memory_space<vmem>>, %arg3: memref<1x64x256xf32, #tpu.memory_space<vmem>>) attributes {dimension_semantics = [#tpu.dimension_semantics<parallel>], iteration_bounds = array<i64: 2>, scalar_prefetch = 0 : i64, scratch_operands = 0 : i64, tpu.core_type = #tpu.core_type<tc>, window_params = [{transform_indices = @transform_0, window_bounds = array<i64: 1, 169, 256>}, {pipeline_mode = #tpu.pipeline_mode<synchronous>, transform_indices = @transform_1, window_bounds = array<i64: 64, 169>}, {transform_indices = @transform_2, window_bounds = array<i64: 1, 64, 256>}]} {
    %c0 = arith.constant 0 : index
    %c0_0 = arith.constant 0 : index
    %0 = vector.load %arg2[%c0, %c0_0] : memref<64x169xf32, #tpu.memory_space<vmem>>, vector<64x169xf32>
    %c0_1 = arith.constant 0 : index
    %c0_2 = arith.constant 0 : index
    %c0_3 = arith.constant 0 : index
    %1 = vector.load %arg1[%c0_1, %c0_2, %c0_3] : memref<1x169x256xf32, #tpu.memory_space<vmem>>, vector<1x169x256xf32>
    %2 = vector.shape_cast %1 : vector<1x169x256xf32> to vector<169x256xf32>
    %cst = arith.constant dense<0.000000e+00> : vector<64x256xf32>
    %3 = tpu.matmul %0, %2, %cst {dimension_numbers = #tpu.dot_dimension_numbers<[1], [0], [0], [1], [0, 0, 1, 1], [], []>} : vector<64x169xf32>, vector<169x256xf32>, vector<64x256xf32> -> vector<64x256xf32>
    %cst_4 = arith.constant 0.000000e+00 : f32
    %4 = vector.broadcast %cst_4 : f32 to vector<64x256xf32>
    %5 = arith.maximumf %3, %4 : vector<64x256xf32>
    %c0_5 = arith.constant 0 : index
    %c0_6 = arith.constant 0 : index
    %c0_7 = arith.constant 0 : index
    %6 = vector.load %arg3[%c0_5, %c0_6, %c0_7] : memref<1x64x256xf32, #tpu.memory_space<vmem>>, vector<1x64x256xf32>
    %7 = vector.shape_cast %6 : vector<1x64x256xf32> to vector<64x256xf32>
    %8 = vector.shape_cast %5 : vector<64x256xf32> to vector<1x64x256xf32>
    tpu.vector_store %arg3[%c0_5, %c0_6, %c0_7], %8 {strides = array<i32>} : memref<1x64x256xf32, #tpu.memory_space<vmem>>, vector<1x64x256xf32>,
    return
  }
  func.func @transform_0(%arg0: i32) -> (i32, i32, i32) {
    %c0_i32 = arith.constant 0 : i32
    %c0_i32_0 = arith.constant 0 : i32
    %c0_i32_1 = arith.constant 0 : i32
    return %arg0, %c0_i32, %c0_i32_0 : i32, i32, i32
  }
  func.func @transform_1(%arg0: i32) -> (i32, i32) {
    %c0_i32 = arith.constant 0 : i32
    %c0_i32_0 = arith.constant 0 : i32
    %c0_i32_1 = arith.constant 0 : i32
    return %c0_i32, %c0_i32_0 : i32, i32
  }
  func.func @transform_2(%arg0: i32) -> (i32, i32, i32) {
    %c0_i32 = arith.constant 0 : i32
    %c0_i32_0 = arith.constant 0 : i32
    %c0_i32_1 = arith.constant 0 : i32
    return %arg0, %c0_i32, %c0_i32_0 : i32, i32, i32
  }
}

module attributes {stable_mosaic.version = 11 : i64} {
  func.func @_mlp_head_kernel(%arg0: i32, %arg1: memref<2x8192xf32, #tpu.memory_space<vmem>>, %arg2: memref<8192x80xbf16, #tpu.memory_space<vmem>>, %arg3: memref<80x15xf32, #tpu.memory_space<vmem>>, %arg4: memref<15x10xf32, #tpu.memory_space<vmem>>, %arg5: memref<2x10xf32, #tpu.memory_space<vmem>>, %arg6: memref<2x80xf32, #tpu.memory_space<vmem>>) attributes {dimension_semantics = [#tpu.dimension_semantics<arbitrary>], iteration_bounds = array<i64: 2>, scalar_prefetch = 0 : i64, scratch_operands = 1 : i64, tpu.core_type = #tpu.core_type<tc>, window_params = [{transform_indices = @transform_0, window_bounds = array<i64: 2, 8192>}, {transform_indices = @transform_1, window_bounds = array<i64: 8192, 80>}, {pipeline_mode = #tpu.pipeline_mode<synchronous>, transform_indices = @transform_2, window_bounds = array<i64: 80, 15>}, {pipeline_mode = #tpu.pipeline_mode<synchronous>, transform_indices = @transform_3, window_bounds = array<i64: 15, 10>}, {pipeline_mode = #tpu.pipeline_mode<synchronous>, transform_indices = @transform_4, window_bounds = array<i64: 2, 10>}]} {
    %c0_i32 = arith.constant 0 : i32
    %0 = arith.cmpi eq, %arg0, %c0_i32 : i32
    %1 = arith.extui %0 : i1 to i32
    %c0_i32_0 = arith.constant 0 : i32
    %2 = arith.cmpi ne, %1, %c0_i32_0 : i32
    scf.if %2 {
      %cst_9 = arith.constant 0.000000e+00 : f32
      %13 = vector.broadcast %cst_9 : f32 to vector<2x80xf32>
      %c0_10 = arith.constant 0 : index
      %c0_11 = arith.constant 0 : index
      %14 = vector.load %arg6[%c0_10, %c0_11] : memref<2x80xf32, #tpu.memory_space<vmem>>, vector<2x80xf32>
      tpu.vector_store %arg6[%c0_10, %c0_11], %13 {strides = array<i32>} : memref<2x80xf32, #tpu.memory_space<vmem>>, vector<2x80xf32>,
    } else {
    }
    %c0 = arith.constant 0 : index
    %c0_1 = arith.constant 0 : index
    %3 = vector.load %arg6[%c0, %c0_1] : memref<2x80xf32, #tpu.memory_space<vmem>>, vector<2x80xf32>
    %c0_2 = arith.constant 0 : index
    %c0_3 = arith.constant 0 : index
    %4 = vector.load %arg1[%c0_2, %c0_3] : memref<2x8192xf32, #tpu.memory_space<vmem>>, vector<2x8192xf32>
    %c0_4 = arith.constant 0 : index
    %c0_5 = arith.constant 0 : index
    %5 = vector.load %arg2[%c0_4, %c0_5] : memref<8192x80xbf16, #tpu.memory_space<vmem>>, vector<8192x80xbf16>
    %6 = arith.extf %5 : vector<8192x80xbf16> to vector<8192x80xf32>
    %cst = arith.constant dense<0.000000e+00> : vector<2x80xf32>
    %7 = tpu.matmul %4, %6, %cst {dimension_numbers = #tpu.dot_dimension_numbers<[1], [0], [0], [1], [0, 0, 1, 1], [], []>} : vector<2x8192xf32>, vector<8192x80xf32>, vector<2x80xf32> -> vector<2x80xf32>
    %8 = arith.addf %3, %7 : vector<2x80xf32>
    %c0_6 = arith.constant 0 : index
    %c0_7 = arith.constant 0 : index
    %9 = vector.load %arg6[%c0_6, %c0_7] : memref<2x80xf32, #tpu.memory_space<vmem>>, vector<2x80xf32>
    tpu.vector_store %arg6[%c0_6, %c0_7], %8 {strides = array<i32>} : memref<2x80xf32, #tpu.memory_space<vmem>>, vector<2x80xf32>,
    %c1_i32 = arith.constant 1 : i32
    %10 = arith.cmpi eq, %arg0, %c1_i32 : i32
    %11 = arith.extui %10 : i1 to i32
    %c0_i32_8 = arith.constant 0 : i32
    %12 = arith.cmpi ne, %11, %c0_i32_8 : i32
    scf.if %12 {
      %c0_9 = arith.constant 0 : index
      %c0_10 = arith.constant 0 : index
      %13 = vector.load %arg6[%c0_9, %c0_10] : memref<2x80xf32, #tpu.memory_space<vmem>>, vector<2x80xf32>
      %c0_11 = arith.constant 0 : index
      %c0_12 = arith.constant 0 : index
      %14 = vector.load %arg3[%c0_11, %c0_12] : memref<80x15xf32, #tpu.memory_space<vmem>>, vector<80x15xf32>
      %cst_13 = arith.constant dense<0.000000e+00> : vector<2x15xf32>
      %15 = tpu.matmul %13, %14, %cst_13 {dimension_numbers = #tpu.dot_dimension_numbers<[1], [0], [0], [1], [0, 0, 1, 1], [], []>} : vector<2x80xf32>, vector<80x15xf32>, vector<2x15xf32> -> vector<2x15xf32>
      %cst_14 = arith.constant 0.000000e+00 : f32
      %16 = vector.broadcast %cst_14 : f32 to vector<2x15xf32>
      %17 = arith.maximumf %15, %16 : vector<2x15xf32>
      %c0_15 = arith.constant 0 : index
      %c0_16 = arith.constant 0 : index
      %18 = vector.load %arg4[%c0_15, %c0_16] : memref<15x10xf32, #tpu.memory_space<vmem>>, vector<15x10xf32>
      %cst_17 = arith.constant dense<0.000000e+00> : vector<2x10xf32>
      %19 = tpu.matmul %17, %18, %cst_17 {dimension_numbers = #tpu.dot_dimension_numbers<[1], [0], [0], [1], [0, 0, 1, 1], [], []>} : vector<2x15xf32>, vector<15x10xf32>, vector<2x10xf32> -> vector<2x10xf32>
      %cst_18 = arith.constant dense<0xFF800000> : vector<2xf32>
      %20 = vector.multi_reduction <maximumf>, %19, %cst_18 [1] : vector<2x10xf32> to vector<2xf32>
      %21 = vector.shape_cast %20 : vector<2xf32> to vector<2x1xf32>
      %22 = vector.broadcast %21 : vector<2x1xf32> to vector<2x10xf32>
      %23 = arith.subf %19, %22 : vector<2x10xf32>
      %24 = math.exp %23 : vector<2x10xf32>
      %cst_19 = arith.constant dense<0.000000e+00> : vector<2xf32>
      %25 = vector.multi_reduction <add>, %24, %cst_19 [1] : vector<2x10xf32> to vector<2xf32>
      %26 = vector.shape_cast %25 : vector<2xf32> to vector<2x1xf32>
      %27 = math.log %26 : vector<2x1xf32>
      %28 = vector.broadcast %27 : vector<2x1xf32> to vector<2x10xf32>
      %29 = arith.subf %23, %28 : vector<2x10xf32>
      %c0_20 = arith.constant 0 : index
      %c0_21 = arith.constant 0 : index
      %30 = vector.load %arg5[%c0_20, %c0_21] : memref<2x10xf32, #tpu.memory_space<vmem>>, vector<2x10xf32>
      tpu.vector_store %arg5[%c0_20, %c0_21], %29 {strides = array<i32>} : memref<2x10xf32, #tpu.memory_space<vmem>>, vector<2x10xf32>,
    } else {
    }
    return
  }
  func.func @transform_0(%arg0: i32) -> (i32, i32) {
    %c0_i32 = arith.constant 0 : i32
    %c0_i32_0 = arith.constant 0 : i32
    return %c0_i32, %arg0 : i32, i32
  }
  func.func @transform_1(%arg0: i32) -> (i32, i32) {
    %c0_i32 = arith.constant 0 : i32
    %c0_i32_0 = arith.constant 0 : i32
    return %arg0, %c0_i32 : i32, i32
  }
  func.func @transform_2(%arg0: i32) -> (i32, i32) {
    %c0_i32 = arith.constant 0 : i32
    %c0_i32_0 = arith.constant 0 : i32
    %c0_i32_1 = arith.constant 0 : i32
    return %c0_i32, %c0_i32_0 : i32, i32
  }
  func.func @transform_3(%arg0: i32) -> (i32, i32) {
    %c0_i32 = arith.constant 0 : i32
    %c0_i32_0 = arith.constant 0 : i32
    %c0_i32_1 = arith.constant 0 : i32
    return %c0_i32, %c0_i32_0 : i32, i32
  }
  func.func @transform_4(%arg0: i32) -> (i32, i32) {
    %c0_i32 = arith.constant 0 : i32
    %c0_i32_0 = arith.constant 0 : i32
    %c0_i32_1 = arith.constant 0 : i32
    return %c0_i32, %c0_i32_0 : i32, i32
  }
}

</mosaic_0001>

<bundles_post_ra>
// kernel: forward.2
= control target key start
LH: loop header
LB: loop body
LE: loop exit
PB: predicated region body
PF: predicated region fallthrough
CT: control target
= control target key end

     0   :  { %s559_s9 = smov 0   ;;  %s700_s0 = inlined_call_operand.vmem [shape: f32[2,169,256], index: 0, kind: input, shape index: {}]   ;;  %s701_s1 = inlined_call_operand.vmem [shape: f32[64,169], index: 1, kind: input, shape index: {}]   ;;  %s702_s2 = inlined_call_operand.vmem [shape: f32[2,64,256], index: 2, kind: output, shape index: {}]  }
   0x1 LB: > { %s436_s10 = sadd.s32 4294967295, %s541_s9   ;;  %p440_p0 = scmp.ge.s32.totalorder %s541_s9, 1  ;;  %s541_s9 = sphi %s559_s9, %s12_s9  }
   0x2   : > { %p112_p1 = scmp.lt.s32.totalorder %s541_s9, 3 }
   0x4   : > { %p113_p2 = pnand %p440_p0, %p112_p1 }
   0x5   : > { %p134_p3 = scmp.lt.s32.totalorder (!%p113_p2), %s436_s10, 1  ;;  %v145_v0 = vld [vmem:[%s701_s1 + $0x8] sm:$0xff] (!%p113_p2)  ;;  %vm204_vm0 = vcmask (!%p113_p2), 334848   ;;  %vm229_vm1 = vcmask (!%p113_p2), 1040384   ;;  %vm543_vm2 = vmmov (!%p113_p2), 1  }
   0x6   : > { %116 = sbr.rel (%p113_p2) target bundleno = 292 (0x124), region = 28  ;;  %v153_v1 = vld [vmem:[%s701_s1 + $0x48] sm:$0xff] (!%p113_p2)  ;;  %446 = vmatprep.mubr.msk.f32.mxu0 (!%p113_p2), %vm204_vm0, %v145_v0  ;;  %vm498_vm3 = vmpackc.low (!%p113_p2), %vm229_vm1, %vm543_vm2 }
   0x7   : > { %450 = vmatprep.mubr.msk.f32.mxu1 (!%p113_p2), %vm204_vm0, %v153_v1 }
   0xd   : > { %s704_s10 = smov (!%p134_p3, %s436_s10), 1 }
   0xe   : > { %s525_s15 = smul.u32 352, %s704_s10  ;;  %s456_s21 = sshll.u32 %s704_s10, 7 }
   0xf   : > { %s679_s24 = scalar_lea.vmem %s702_s2, %s456_s21 }
  0x10   : > { %s581_s18 = scalar_lea.vmem %s700_s0, %s525_s15 }
  0x11   : > { %v161_v2 = vld [vmem:[%s581_s18 + $0x8] sm:$0xff]  ;;  %v163_v3 = vld [vmem:[%s581_s18 + $0x18] sm:$0xff]  ;;  %v160_v4 = vld [vmem:[%s581_s18] sm:$0xff] }
  0x12   : > { %v457_v5 = vpack.c.bf16 %v163_v3, %v161_v2  ;;  %v162_v6 = vld [vmem:[%s581_s18 + $0x10] sm:$0xff]  ;;  %v165_v7 = vld [vmem:[%s581_s18 + $0x28] sm:$0xff]  ;;  %v167_v8 = vld [vmem:[%s581_s18 + $0x38] sm:$0xff] }
  0x13   : > { %v459_v9 = vpack.c.bf16 %v162_v6, %v160_v4  ;;  %v461_v10 = vpack.c.bf16 %v167_v8, %v165_v7  ;;  %v164_v11 = vld [vmem:[%s581_s18 + $0x20] sm:$0xff]  ;;  %v166_v12 = vld [vmem:[%s581_s18 + $0x30] sm:$0xff]  ;;  %v169_v13 = vld [vmem:[%s581_s18 + $0x48] sm:$0xff] }
  0x14   : > { %458 = vmatprep.subr.bf16.mxu0 %v457_v5  ;;  %503 = vmatprep.subr.bf16.mxu1 %v457_v5  ;;  %v171_v14 = vld [vmem:[%s581_s18 + $0x58] sm:$0xff]  ;;  %v463_v15 = vpack.c.bf16 %v166_v12, %v164_v11  ;;  %v168_v17 = vld [vmem:[%s581_s18 + $0x40] sm:$0xff]  ;;  %v170_v18 = vld [vmem:[%s581_s18 + $0x50] sm:$0xff] }
  0x15   : > { %460 = vmatpush1.bf16.msra.mxu0 %v459_v9  ;;  %514 = vmatpush1.bf16.msra.mxu1 %v459_v9  ;;  %v465_v16 = vpack.c.bf16 %v171_v14, %v169_v13  ;;  %v173_v19 = vld [vmem:[%s581_s18 + $0x68] sm:$0xff]  ;;  %v175_v20 = vld [vmem:[%s581_s18 + $0x78] sm:$0xff]  ;;  %v467_v21 = vpack.c.bf16 %v170_v18, %v168_v17  ;;  %v172_v23 = vld [vmem:[%s581_s18 + $0x60] sm:$0xff] }
  0x16   : > { %462 = vmatprep.subr.bf16.mxu0 %v461_v10  ;;  %504 = vmatprep.subr.bf16.mxu1 %v461_v10  ;;  %v469_v22 = vpack.c.bf16 %v175_v20, %v173_v19  ;;  %v174_v24 = vld [vmem:[%s581_s18 + $0x70] sm:$0xff]  ;;  %v177_v25 = vld [vmem:[%s581_s18 + $0x88] sm:$0xff]  ;;  %v179_v26 = vld [vmem:[%s581_s18 + $0x98] sm:$0xff] }
  0x17   : > { %v471_v27 = vpack.c.bf16 %v174_v24, %v172_v23  ;;  %v473_v28 = vpack.c.bf16 %v179_v26, %v177_v25  ;;  %v176_v29 = vld [vmem:[%s581_s18 + $0x80] sm:$0xff]  ;;  %v178_v30 = vld [vmem:[%s581_s18 + $0x90] sm:$0xff]  ;;  %v181_v31 = vld [vmem:[%s581_s18 + $0xa8] sm:$0xff] }
  0x18   : > { %v183_v32 = vld [vmem:[%s581_s18 + $0xb8] sm:$0xff]  ;;  %v475_v33 = vpack.c.bf16 %v178_v30, %v176_v29  ;;  %v180_v35 = vld [vmem:[%s581_s18 + $0xa0] sm:$0xff]  ;;  %v182_v36 = vld [vmem:[%s581_s18 + $0xb0] sm:$0xff] }
  0x19   : > { %464 = vmatpush1.bf16.msra.mxu0 %v463_v15  ;;  %515 = vmatpush1.bf16.msra.mxu1 %v463_v15  ;;  %v477_v34 = vpack.c.bf16 %v183_v32, %v181_v31  ;;  %v185_v37 = vld [vmem:[%s581_s18 + $0xc8] sm:$0xff]  ;;  %v187_v38 = vld [vmem:[%s581_s18 + $0xd8] sm:$0xff]  ;;  %v479_v39 = vpack.c.bf16 %v182_v36, %v180_v35  ;;  %v184_v41 = vld [vmem:[%s581_s18 + $0xc0] sm:$0xff] }
  0x1a   : > { %466 = vmatprep.subr.bf16.mxu0 %v465_v16  ;;  %505 = vmatprep.subr.bf16.mxu1 %v465_v16  ;;  %v481_v40 = vpack.c.bf16 %v187_v38, %v185_v37  ;;  %v186_v42 = vld [vmem:[%s581_s18 + $0xd0] sm:$0xff]  ;;  %v189_v43 = vld [vmem:[%s581_s18 + $0xe8] sm:$0xff]  ;;  %v191_v44 = vld [vmem:[%s581_s18 + $0xf8] sm:$0xff] }
  0x1b   : > { %v483_v45 = vpack.c.bf16 %v186_v42, %v184_v41  ;;  %v485_v46 = vpack.c.bf16 %v191_v44, %v189_v43  ;;  %v188_v47 = vld [vmem:[%s581_s18 + $0xe0] sm:$0xff]  ;;  %v190_v48 = vld [vmem:[%s581_s18 + $0xf0] sm:$0xff]  ;;  %v193_v49 = vld [vmem:[%s581_s18 + $0x108] sm:$0xff] }
  0x1c   : > { %v195_v50 = vld [vmem:[%s581_s18 + $0x118] sm:$0xff]  ;;  %v487_v51 = vpack.c.bf16 %v190_v48, %v188_v47  ;;  %v192_v53 = vld [vmem:[%s581_s18 + $0x100] sm:$0xff]  ;;  %v194_v54 = vld [vmem:[%s581_s18 + $0x110] sm:$0xff] }
  0x1d   : > { %468 = vmatpush1.bf16.msra.mxu0 %v467_v21  ;;  %516 = vmatpush1.bf16.msra.mxu1 %v467_v21  ;;  %v489_v52 = vpack.c.bf16 %v195_v50, %v193_v49  ;;  %v197_v55 = vld [vmem:[%s581_s18 + $0x128] sm:$0xff]  ;;  %v199_v56 = vld [vmem:[%s581_s18 + $0x138] sm:$0xff]  ;;  %v491_v57 = vpack.c.bf16 %v194_v54, %v192_v53  ;;  %v196_v59 = vld [vmem:[%s581_s18 + $0x120] sm:$0xff] }
  0x1e   : > { %470 = vmatprep.subr.bf16.mxu0 %v469_v22  ;;  %506 = vmatprep.subr.bf16.mxu1 %v469_v22  ;;  %v493_v58 = vpack.c.bf16 %v199_v56, %v197_v55  ;;  %v198_v60 = vld [vmem:[%s581_s18 + $0x130] sm:$0xff]  ;;  %v201_v61 = vld [vmem:[%s581_s18 + $0x148] sm:$0xff]  ;;  %v203_v62 = vld [vmem:[%s581_s18 + $0x158] sm:$0x1] }
  0x1f   : > { %v495_v63 = vpack.c.bf16 %v198_v60, %v196_v59  ;;  %v497_v0 = vpack.c.bf16 %v203_v62, %v201_v61  ;;  %v200_v1 = vld [vmem:[%s581_s18 + $0x140] sm:$0xff]  ;;  %v202_v2 = vld [vmem:[%s581_s18 + $0x150] sm:$0x1]  ;;  %v147_v6 = vld [vmem:[%s701_s1 + $0x18] sm:$0xff] }
  0x20   : > { %v500_v3 = vpack.c.bf16 %v202_v2, %v200_v1  ;;  %v144_v4 = vld [vmem:[%s701_s1] sm:$0xff]  ;;  %v155_v7 = vld [vmem:[%s701_s1 + $0x58] sm:$0xff]  ;;  %v146_v8 = vld [vmem:[%s701_s1 + $0x10] sm:$0xff] }
  0x21   : > { %472 = vmatpush1.bf16.msra.mxu0 %v471_v27  ;;  %517 = vmatpush1.bf16.msra.mxu1 %v471_v27  ;;  %v152_v5 = vld [vmem:[%s701_s1 + $0x40] sm:$0xff]  ;;  %v154_v9 = vld [vmem:[%s701_s1 + $0x50] sm:$0xff]  ;;  %v149_v10 = vld [vmem:[%s701_s1 + $0x28] sm:$0xff] }
  0x22   : > { %474 = vmatprep.subr.bf16.mxu0 %v473_v28  ;;  %507 = vmatprep.subr.bf16.mxu1 %v473_v28  ;;  %v157_v11 = vld [vmem:[%s701_s1 + $0x68] sm:$0xff]  ;;  %v148_v12 = vld [vmem:[%s701_s1 + $0x20] sm:$0xff]  ;;  %v151_v14 = vld [vmem:[%s701_s1 + $0x38] sm:$0xff] }
  0x23   : > { %v156_v13 = vld [vmem:[%s701_s1 + $0x60] sm:$0xff]  ;;  %v159_v15 = vld [vmem:[%s701_s1 + $0x78] sm:$0xff]  ;;  %v150_v16 = vld [vmem:[%s701_s1 + $0x30] sm:$0xff] }
  0x24   : > { %v158_v17 = vld [vmem:[%s701_s1 + $0x70] sm:$0xff] }
  0x25   : > { %476 = vmatpush1.bf16.msra.mxu0 %v475_v33  ;;  %518 = vmatpush1.bf16.msra.mxu1 %v475_v33 }
  0x26   : > { %478 = vmatprep.subr.bf16.mxu0 %v477_v34  ;;  %508 = vmatprep.subr.bf16.mxu1 %v477_v34 }
  0x29   : > { %480 = vmatpush1.bf16.msra.mxu0 %v479_v39  ;;  %519 = vmatpush1.bf16.msra.mxu1 %v479_v39 }
  0x2a   : > { %482 = vmatprep.subr.bf16.mxu0 %v481_v40  ;;  %509 = vmatprep.subr.bf16.mxu1 %v481_v40 }
  0x2d   : > { %484 = vmatpush1.bf16.msra.mxu0 %v483_v45  ;;  %520 = vmatpush1.bf16.msra.mxu1 %v483_v45 }
  0x2e   : > { %486 = vmatprep.subr.bf16.mxu0 %v485_v46  ;;  %510 = vmatprep.subr.bf16.mxu1 %v485_v46 }
  0x31   : > { %488 = vmatpush1.bf16.msra.mxu0 %v487_v51  ;;  %521 = vmatpush1.bf16.msra.mxu1 %v487_v51 }
  0x32   : > { %490 = vmatprep.subr.bf16.mxu0 %v489_v52  ;;  %511 = vmatprep.subr.bf16.mxu1 %v489_v52 }
  0x35   : > { %492 = vmatpush1.bf16.msra.mxu0 %v491_v57  ;;  %522 = vmatpush1.bf16.msra.mxu1 %v491_v57 }
  0x36   : > { %494 = vmatprep.subr.bf16.mxu0 %v493_v58  ;;  %512 = vmatprep.subr.bf16.mxu1 %v493_v58 }
  0x39   : > { %496 = vmatpush1.bf16.msra.mxu0 %v495_v63  ;;  %523 = vmatpush1.bf16.msra.mxu1 %v495_v63 }
  0x3a   : > { %499 = vmatprep.subr.msk.bf16.mxu0 %vm498_vm3, %v497_v0  ;;  %513 = vmatprep.subr.msk.bf16.mxu1 %vm498_vm3, %v497_v0 }
  0x3d   : > { %502 = vmatpush1.bf16.msk.msra.mxu0 %vm498_vm3, %v500_v3  ;;  %524 = vmatpush1.bf16.msk.msra.mxu1 %vm498_vm3, %v500_v3 }
  0x40   : > { %301 = vmatmul.mubr.f32.vlgmr.msra.gmra.mrb[0].mxu0 %v144_v4  ;;  %325 = vmatmul.mubr.f32.vlgmr.msra.gmra.mrb[0].mxu1 %v152_v5 }
  0x41   : > { %447 = vmatprep.mubr.msk.f32.mxu0 %vm204_vm0, %v147_v6  ;;  %451 = vmatprep.mubr.msk.f32.mxu1 %vm204_vm0, %v155_v7 }
  0x44   : > { %307 = vmatmul.mubr.f32.gmra.mrb[2].mxu0 %v146_v8  ;;  %331 = vmatmul.mubr.f32.gmra.mrb[2].mxu1 %v154_v9 }
  0x45   : > { %448 = vmatprep.mubr.msk.f32.mxu0 %vm204_vm0, %v149_v10  ;;  %452 = vmatprep.mubr.msk.f32.mxu1 %vm204_vm0, %v157_v11 }
  0x48   : > { %313 = vmatmul.mubr.f32.gmra.mrb[4].mxu0 %v148_v12  ;;  %337 = vmatmul.mubr.f32.gmra.mrb[4].mxu1 %v156_v13 }
  0x49   : > { %449 = vmatprep.mubr.msk.f32.mxu0 %vm204_vm0, %v151_v14  ;;  %453 = vmatprep.mubr.msk.f32.mxu1 %vm204_vm0, %v159_v15 }
  0x4c   : > { %319 = vmatmul.mubr.f32.gmra.mrb[6].mxu0 %v150_v16  ;;  %343 = vmatmul.mubr.f32.gmra.mrb[6].mxu1 %v158_v17 }
 0x113   : > { %v302_v18 = vpop.f32.mrb[0].mxu0  ;;  %v326_v19 = vpop.f32.mrb[0].mxu1 }
 0x114   : > { %v349_v20 = vmax.f32 %v302_v18, 0.0  ;;  %v357_v21 = vmax.f32 %v326_v19, 0.0  ;;  %v304_v22 = vpop.f32.mrb[1].mxu0  ;;  %v328_v23 = vpop.f32.mrb[1].mxu1 }
 0x115   : > { %v350_v24 = vmax.f32 %v304_v22, 0.0  ;;  %v358_v25 = vmax.f32 %v328_v23, 0.0 }
 0x116   : > { %365 = vst [vmem:[%s679_s24] sm:$0xff] %v349_v20  ;;  %373 = vst [vmem:[%s679_s24 + $0x40] sm:$0xff] %v357_v21 }
 0x117   : > { %366 = vst [vmem:[%s679_s24 + $0x8] sm:$0xff] %v350_v24  ;;  %374 = vst [vmem:[%s679_s24 + $0x48] sm:$0xff] %v358_v25  ;;  %v308_v26 = vpop.f32.mrb[2].mxu0  ;;  %v332_v27 = vpop.f32.mrb[2].mxu1 }
 0x118   : > { %v351_v28 = vmax.f32 %v308_v26, 0.0  ;;  %v359_v29 = vmax.f32 %v332_v27, 0.0  ;;  %v310_v30 = vpop.f32.mrb[3].mxu0  ;;  %v334_v31 = vpop.f32.mrb[3].mxu1 }
 0x119   : > { %v352_v32 = vmax.f32 %v310_v30, 0.0  ;;  %v360_v33 = vmax.f32 %v334_v31, 0.0 }
 0x11a   : > { %367 = vst [vmem:[%s679_s24 + $0x10] sm:$0xff] %v351_v28  ;;  %375 = vst [vmem:[%s679_s24 + $0x50] sm:$0xff] %v359_v29 }
 0x11b   : > { %368 = vst [vmem:[%s679_s24 + $0x18] sm:$0xff] %v352_v32  ;;  %376 = vst [vmem:[%s679_s24 + $0x58] sm:$0xff] %v360_v33  ;;  %v314_v34 = vpop.f32.mrb[4].mxu0  ;;  %v338_v35 = vpop.f32.mrb[4].mxu1 }
 0x11c   : > { %v353_v36 = vmax.f32 %v314_v34, 0.0  ;;  %v361_v37 = vmax.f32 %v338_v35, 0.0  ;;  %v316_v38 = vpop.f32.mrb[5].mxu0  ;;  %v340_v39 = vpop.f32.mrb[5].mxu1 }
 0x11d   : > { %v354_v40 = vmax.f32 %v316_v38, 0.0  ;;  %v362_v41 = vmax.f32 %v340_v39, 0.0 }
 0x11e   : > { %369 = vst [vmem:[%s679_s24 + $0x20] sm:$0xff] %v353_v36  ;;  %377 = vst [vmem:[%s679_s24 + $0x60] sm:$0xff] %v361_v37 }
 0x11f   : > { %370 = vst [vmem:[%s679_s24 + $0x28] sm:$0xff] %v354_v40  ;;  %378 = vst [vmem:[%s679_s24 + $0x68] sm:$0xff] %v362_v41  ;;  %v320_v42 = vpop.f32.mrb[6].mxu0  ;;  %v344_v43 = vpop.f32.mrb[6].mxu1 }
 0x120   : > { %v355_v44 = vmax.f32 %v320_v42, 0.0  ;;  %v363_v45 = vmax.f32 %v344_v43, 0.0  ;;  %v322_v46 = vpop.f32.mrb[7].mxu0  ;;  %v346_v47 = vpop.f32.mrb[7].mxu1 }
 0x121   : > { %v356_v48 = vmax.f32 %v322_v46, 0.0  ;;  %v364_v49 = vmax.f32 %v346_v47, 0.0 }
 0x122   : > { %371 = vst [vmem:[%s679_s24 + $0x30] sm:$0xff] %v355_v44  ;;  %379 = vst [vmem:[%s679_s24 + $0x70] sm:$0xff] %v363_v45 }
 0x123   : > { %372 = vst [vmem:[%s679_s24 + $0x38] sm:$0xff] %v356_v48  ;;  %380 = vst [vmem:[%s679_s24 + $0x78] sm:$0xff] %v364_v49 }
 0x124 PF: > { %s12_s9 = sadd.s32 1, %s541_s9  }
 0x125   : > { %p9_p4 = scmp.ge.s32.totalorder %s12_s9, 4  }
 0x127   :  { %11 = sbr.rel (!%p9_p4) target bundleno = 1 (0x1), region = 58 }

// kernel: forward.3
= control target key start
LH: loop header
LB: loop body
LE: loop exit
PB: predicated region body
PF: predicated region fallthrough
CT: control target
= control target key end

     0   :  { %9 = vsyncpa [#allocation4], 0  ;;  %s10010_s15 = smov 0   ;;  %s10835_s0 = inlined_call_operand.vmem [shape: f32[2,16384], index: 0, kind: input, shape index: {}]   ;;  %s10836_s1 = inlined_call_operand.vmem [shape: bf16[16384,80], index: 1, kind: input, shape index: {}]   ;;  %s10837_s2 = inlined_call_operand.vmem [shape: f32[80,15], index: 2, kind: input, shape index: {}]   ;;  %s10838_s3 = inlined_call_operand.vmem [shape: f32[15,10], index: 3, kind: input, shape index: {}]   ;;  %s10839_s4 = inlined_call_operand.hbm [shape: f32[2,10], index: 4, kind: output, shape index: {}]  }
   0x1 LB: > { %s10016_s16 = sadd.s32 4294967295, %s9976_s15   ;;  %p5119_p0 = scmp.ge.s32.totalorder %s9976_s15, 1  ;;  %s9976_s15 = sphi %s10010_s15, %s15_s15  }
   0x2   : > { %p170_p1 = scmp.lt.s32.totalorder %s9976_s15, 3 }
   0x4   : > { %p171_p2 = pnand %p5119_p0, %p170_p1 }
   0x5   : > { %s5120_s17 = sshll.u32 (!%p171_p2), %s10016_s16, 6  ;;  %s5122_s18 = sshll.u32 (!%p171_p2), %s10016_s16, 10 }
   0x6   : > { %174 = sbr.rel (%p171_p2) target bundleno = 1534 (0x5fe), region = 36  ;;  %p197_p3 = scmp.lt.s32.totalorder (!%p171_p2), %s5120_s17, 127 }
   0x7   : > { %p203_p4 = scmp.lt.s32.totalorder (!%p171_p2), %s5122_s18, 2047  ;;  %p5124_p5 = scmp.ne.s32.totalorder (!%p171_p2), %s10016_s16, 0 }
   0xd   : > { %s10841_s17 = smov (!%p197_p3, %s5120_s17), 127  ;;  %s10843_s18 = smov (!%p203_p4, %s5122_s18), 2047 }
   0xe   : > { %s5121_s19 = sshll.u32 %s10841_s17, 1  ;;  %s5123_s23 = sshll.u32 %s10843_s18, 2  ;;  %vm212_vm0 = vcmask (!%p5124_p5), 648192   ;;  %v9978_v0 = vmov (!%p5124_p5), 0.0  }
   0xf   : > { %s10025_s22 = scalar_lea.vmem %s10835_s0, %s5121_s19  ;;  %s10030_s26 = scalar_lea.vmem %s10836_s1, %s5123_s23  ;;  %213 = vst.msk [vmem:[#allocation2] sm:$0x3] (!%p5124_p5), %vm212_vm0, %v9978_v0 }
  0x10   : > { %211 = sbr.rel (%p5124_p5) target bundleno = 23 (0x17), region = 40 }
  0x17 PF: > { %v7188_v1 = vld [vmem:[%s10030_s26 + $0x40] sm:$0xff]   ;;  %v2299_v4 = vlaneseq  ;;  %v7189_v6 = vld [vmem:[%s10030_s26 + $0x48] sm:$0xff]   ;;  %v9979_v8 = vmov 1983009808   ;;  %v7190_v14 = vld [vmem:[%s10030_s26 + $0x50] sm:$0xff]   ;;  %vm4872_vm1 = vcmask 648192  }
  0x18   : > { %v7204_v2 = vld [vmem:[%s10030_s26 + $0xc0] sm:$0xff]   ;;  %8857 = vmatprep.subr.bf16.mxu0 %v7188_v1  ;;  %v7205_v7 = vld [vmem:[%s10030_s26 + $0xc8] sm:$0xff]   ;;  %v2297_v9 = vunpack.c.l.s4 %v9979_v8  ;;  %v7206_v15 = vld [vmem:[%s10030_s26 + $0xd0] sm:$0xff]   ;;  %p5125_p6 = scmp.ne.s32.totalorder %s10016_s16, 1 }
  0x19   : > { %v5134_v3 = vld [vmem:[%s10030_s26] sm:$0xff]   ;;  %8889 = vmatprep.subr.bf16.mxu1 %v7204_v2  ;;  %v7181_v10 = vld [vmem:[%s10030_s26 + $0x8] sm:$0xff]   ;;  %v2300_v13 = vshrl.u32 %v2299_v4, 7  ;;  %v7182_v16 = vld [vmem:[%s10030_s26 + $0x10] sm:$0xff]   ;;  %vm9981_vm2 = vmmov (!%p5125_p6), 0   ;;  %vm4889_vm3 = vcmask (!%p5125_p6), 654336  }
  0x1a   : > { %v7196_v5 = vld [vmem:[%s10030_s26 + $0x80] sm:$0xff]   ;;  %8859 = vmatpush3.bf16.msra.mxu0 %v5134_v3  ;;  %v7197_v11 = vld [vmem:[%s10030_s26 + $0x88] sm:$0xff]   ;;  %v2298_v12 = vunpack.c.0.s8 %v2297_v9  ;;  %v7198_v17 = vld [vmem:[%s10030_s26 + $0x90] sm:$0xff]   ;;  %vm4970_vm4 = vcmask (!%p5125_p6), 1046528   ;;  %vm9983_vm5 = vmmov (!%p5125_p6), 1   ;;  %vm4966_vm7 = vcmask (!%p5125_p6), 121856  }
  0x1b   : > { %8891 = vmatpush3.bf16.msra.mxu1 %v7196_v5  ;;  %8861 = vmatprep.subr.bf16.mxu0 %v7189_v6  ;;  %v7191_v19 = vld [vmem:[%s10030_s26 + $0x58] sm:$0xff]   ;;  %v215_v21 = vld [vmem:[%s10025_s22] sm:$0xff]  ;;  %v7193_v33 = vld [vmem:[%s10030_s26 + $0x68] sm:$0xff]   ;;  %vm5044_vm8 = vcmask (!%p5125_p6), 74752  }
  0x1c   : > { %8893 = vmatprep.subr.bf16.mxu1 %v7205_v7  ;;  %v10045_v18 = vsub.s32 %v2298_v12, %v2300_v13  ;;  %v7207_v20 = vld [vmem:[%s10030_s26 + $0xd8] sm:$0xff]   ;;  %v2295_v25 = vcombine.high %v215_v21, %v215_v21  ;;  %v7192_v26 = vld [vmem:[%s10030_s26 + $0x60] sm:$0xff]   ;;  %v7209_v34 = vld [vmem:[%s10030_s26 + $0xe8] sm:$0xff]  }
  0x1d   : > { %v7183_v22 = vld [vmem:[%s10030_s26 + $0x18] sm:$0xff]   ;;  %v7208_v27 = vld [vmem:[%s10030_s26 + $0xe0] sm:$0xff]   ;;  %v7185_v35 = vld [vmem:[%s10030_s26 + $0x28] sm:$0xff]  }
  0x1e   : > { %8863 = vmatpush3.bf16.msra.mxu0 %v7181_v10  ;;  %v7199_v23 = vld [vmem:[%s10030_s26 + $0x98] sm:$0xff]   ;;  %v2302_v24 = vrot.slane %v215_v21, %v10045_v18  ;;  %v2309_v29 = vrot.slane %v2295_v25, %v10045_v18  ;;  %v7184_v30 = vld [vmem:[%s10030_s26 + $0x20] sm:$0xff]   ;;  %v7201_v36 = vld [vmem:[%s10030_s26 + $0xa8] sm:$0xff]  }
  0x1f   : > { %8895 = vmatpush3.bf16.msra.mxu1 %v7197_v11  ;;  %8865 = vmatprep.subr.bf16.mxu0 %v7190_v14  ;;  %v7200_v31 = vld [vmem:[%s10030_s26 + $0xa0] sm:$0xff]   ;;  %v7194_v37 = vld [vmem:[%s10030_s26 + $0x70] sm:$0xff]   ;;  %v216_v39 = vld [vmem:[%s10025_s22 + $0x8] sm:$0xff] }
  0x20   : > { %8897 = vmatprep.subr.bf16.mxu1 %v7206_v15  ;;  %v2310_v28 = vcombine.high %v2302_v24, %v2302_v24  ;;  %v2311_v32 = vcombine.high %v2309_v29, %v2309_v29  ;;  %v7210_v38 = vld [vmem:[%s10030_s26 + $0xf0] sm:$0xff]   ;;  %v7195_v42 = vld [vmem:[%s10030_s26 + $0x78] sm:$0xff]   ;;  %v2312_v44 = vcombine.high %v216_v39, %v216_v39  ;;  %v7220_v47 = vld [vmem:[%s10030_s26 + $0x140] sm:$0xff]   ;;  %v10074_v49 = vrot.slane %v216_v39, %v10045_v18 }
  0x21   : > { %v7186_v40 = vld [vmem:[%s10030_s26 + $0x30] sm:$0xff]   ;;  %v7211_v43 = vld [vmem:[%s10030_s26 + $0xf8] sm:$0xff]   ;;  %v7236_v48 = vld [vmem:[%s10030_s26 + $0x1c0] sm:$0xff]  }
  0x22   : > { %8867 = vmatpush3.bf16.msra.mxu0 %v7182_v16  ;;  %2695 = vmatprep.mubr.f32.mxu0 %v2310_v28  ;;  %v7202_v41 = vld [vmem:[%s10030_s26 + $0xb0] sm:$0xff]   ;;  %v7187_v45 = vld [vmem:[%s10030_s26 + $0x38] sm:$0xff]   ;;  %v10077_v50 = vrot.slane %v2312_v44, %v10045_v18  ;;  %v7212_v51 = vld [vmem:[%s10030_s26 + $0x100] sm:$0xff]   ;;  %v2327_v55 = vcombine.high %v10074_v49, %v10074_v49 }
  0x23   : > { %8899 = vmatpush3.bf16.msra.mxu1 %v7198_v17  ;;  %8869 = vmatprep.subr.bf16.mxu0 %v7191_v19  ;;  %v7203_v46 = vld [vmem:[%s10030_s26 + $0xb8] sm:$0xff]   ;;  %v7228_v52 = vld [vmem:[%s10030_s26 + $0x180] sm:$0xff]   ;;  %v7221_v53 = vld [vmem:[%s10030_s26 + $0x148] sm:$0xff]  }
  0x24   : > { %8901 = vmatprep.subr.bf16.mxu1 %v7207_v20  ;;  %2765 = vmatprep.mubr.f32.mxu1 %v2311_v32  ;;  %v7237_v54 = vld [vmem:[%s10030_s26 + $0x1c8] sm:$0xff]   ;;  %v2328_v56 = vcombine.high %v10077_v50, %v10077_v50  ;;  %v7222_v59 = vld [vmem:[%s10030_s26 + $0x150] sm:$0xff]   ;;  %v7223_v63 = vld [vmem:[%s10030_s26 + $0x158] sm:$0xff]  }
  0x25   : > { %v7213_v57 = vld [vmem:[%s10030_s26 + $0x108] sm:$0xff]   ;;  %v7238_v60 = vld [vmem:[%s10030_s26 + $0x1d0] sm:$0xff]   ;;  %v7239_v0 = vld [vmem:[%s10030_s26 + $0x1d8] sm:$0xff]  }
  0x26   : > { %8871 = vmatpush3.bf16.msra.mxu0 %v7183_v22  ;;  %v7229_v58 = vld [vmem:[%s10030_s26 + $0x188] sm:$0xff]   ;;  %v7214_v61 = vld [vmem:[%s10030_s26 + $0x110] sm:$0xff]   ;;  %v7215_v1 = vld [vmem:[%s10030_s26 + $0x118] sm:$0xff]  }
  0x27   : > { %8903 = vmatpush3.bf16.msra.mxu1 %v7199_v23  ;;  %8873 = vmatprep.subr.bf16.mxu0 %v7192_v26  ;;  %v7230_v62 = vld [vmem:[%s10030_s26 + $0x190] sm:$0xff]   ;;  %v7231_v2 = vld [vmem:[%s10030_s26 + $0x198] sm:$0xff]   ;;  %v7224_v3 = vld [vmem:[%s10030_s26 + $0x160] sm:$0xff]  }
  0x28   : > { %8905 = vmatprep.subr.bf16.mxu1 %v7208_v27  ;;  %v7240_v4 = vld [vmem:[%s10030_s26 + $0x1e0] sm:$0xff]   ;;  %v7225_v7 = vld [vmem:[%s10030_s26 + $0x168] sm:$0xff]   ;;  %v7226_v11 = vld [vmem:[%s10030_s26 + $0x170] sm:$0xff]  }
  0x29   : > { %v7216_v5 = vld [vmem:[%s10030_s26 + $0x120] sm:$0xff]   ;;  %v7241_v8 = vld [vmem:[%s10030_s26 + $0x1e8] sm:$0xff]   ;;  %v7242_v12 = vld [vmem:[%s10030_s26 + $0x1f0] sm:$0xff]  }
  0x2a   : > { %8875 = vmatpush3.bf16.msra.mxu0 %v7184_v30  ;;  %v7232_v6 = vld [vmem:[%s10030_s26 + $0x1a0] sm:$0xff]   ;;  %v7217_v9 = vld [vmem:[%s10030_s26 + $0x128] sm:$0xff]   ;;  %v217_v13 = vld [vmem:[%s10025_s22 + $0x10] sm:$0xff] }
  0x2b   : > { %8907 = vmatpush3.bf16.msra.mxu1 %v7200_v31  ;;  %8877 = vmatprep.subr.bf16.mxu0 %v7193_v33  ;;  %v7233_v10 = vld [vmem:[%s10030_s26 + $0x1a8] sm:$0xff]   ;;  %v7218_v14 = vld [vmem:[%s10030_s26 + $0x130] sm:$0xff]   ;;  %v7227_v16 = vld [vmem:[%s10030_s26 + $0x178] sm:$0xff]   ;;  %v2329_v19 = vcombine.high %v217_v13, %v217_v13 }
  0x2c   : > { %8909 = vmatprep.subr.bf16.mxu1 %v7209_v34  ;;  %v7234_v15 = vld [vmem:[%s10030_s26 + $0x1b0] sm:$0xff]   ;;  %v7243_v17 = vld [vmem:[%s10030_s26 + $0x1f8] sm:$0xff]   ;;  %v7252_v22 = vld [vmem:[%s10030_s26 + $0x240] sm:$0xff]  }
  0x2d   : > { %v7219_v20 = vld [vmem:[%s10030_s26 + $0x138] sm:$0xff]   ;;  %v7268_v23 = vld [vmem:[%s10030_s26 + $0x2c0] sm:$0xff]   ;;  %v10120_v25 = vrot.slane %v2329_v19, %v10045_v18  ;;  %v7253_v28 = vld [vmem:[%s10030_s26 + $0x248] sm:$0xff]  }
  0x2e   : > { %8879 = vmatpush3.bf16.msra.mxu0 %v7185_v35  ;;  %v7235_v21 = vld [vmem:[%s10030_s26 + $0x1b8] sm:$0xff]   ;;  %v7244_v26 = vld [vmem:[%s10030_s26 + $0x200] sm:$0xff]   ;;  %v7245_v32 = vld [vmem:[%s10030_s26 + $0x208] sm:$0xff]  }
  0x2f   : > { %8911 = vmatpush3.bf16.msra.mxu1 %v7201_v36  ;;  %8881 = vmatprep.subr.bf16.mxu0 %v7194_v37  ;;  %v7260_v27 = vld [vmem:[%s10030_s26 + $0x280] sm:$0xff]   ;;  %v2345_v31 = vcombine.high %v10120_v25, %v10120_v25  ;;  %v7261_v33 = vld [vmem:[%s10030_s26 + $0x288] sm:$0xff]   ;;  %v7254_v34 = vld [vmem:[%s10030_s26 + $0x250] sm:$0xff]  }
  0x30   : > { %8913 = vmatprep.subr.bf16.mxu1 %v7210_v38  ;;  %v7270_v35 = vld [vmem:[%s10030_s26 + $0x2d0] sm:$0xff]   ;;  %v7255_v38 = vld [vmem:[%s10030_s26 + $0x258] sm:$0xff]   ;;  %v7248_v44 = vld [vmem:[%s10030_s26 + $0x220] sm:$0xff]  }
  0x31   : > { %v7246_v36 = vld [vmem:[%s10030_s26 + $0x210] sm:$0xff]   ;;  %v7271_v39 = vld [vmem:[%s10030_s26 + $0x2d8] sm:$0xff]   ;;  %v7280_v19 = vld [vmem:[%s10030_s26 + $0x320] sm:$0xff]  }
  0x32   : > { %8883 = vmatpush3.bf16.msra.mxu0 %v7186_v40  ;;  %v7262_v37 = vld [vmem:[%s10030_s26 + $0x290] sm:$0xff]   ;;  %v7247_v40 = vld [vmem:[%s10030_s26 + $0x218] sm:$0xff]   ;;  %vm9897_vm6 = vmpackc.low (!%p5125_p6), %vm4970_vm4, %vm9983_vm5 }
  0x33   : > { %8915 = vmatpush3.bf16.msra.mxu1 %v7202_v41  ;;  %8885 = vmatprep.subr.bf16.mxu0 %v7195_v42  ;;  %v7263_v41 = vld [vmem:[%s10030_s26 + $0x298] sm:$0xff]   ;;  %v7256_v42 = vld [vmem:[%s10030_s26 + $0x260] sm:$0xff]  }
  0x34   : > { %8917 = vmatprep.subr.bf16.mxu1 %v7211_v43  ;;  %v7272_v43 = vld [vmem:[%s10030_s26 + $0x2e0] sm:$0xff]  }
  0x36   : > { %8887 = vmatpush3.bf16.msra.mxu0 %v7187_v45  ;;  %v7264_v45 = vld [vmem:[%s10030_s26 + $0x2a0] sm:$0xff]  }
  0x37   : > { %8919 = vmatpush3.bf16.msra.mxu1 %v7203_v46  ;;  %8921 = vmatprep.subr.bf16.mxu0 %v7220_v47  ;;  %v7257_v46 = vld [vmem:[%s10030_s26 + $0x268] sm:$0xff]  }
  0x38   : > { %8953 = vmatprep.subr.bf16.mxu1 %v7236_v48  ;;  %v7273_v47 = vld [vmem:[%s10030_s26 + $0x2e8] sm:$0xff]  }
  0x39   : > { %2696 = vmatmul.mubr.f32.vlgmr.msra.gmra.mrb[0].mxu0 %v2302_v24  ;;  %v10117_v24 = vrot.slane %v217_v13, %v10045_v18  ;;  %v7249_v48 = vld [vmem:[%s10030_s26 + $0x228] sm:$0xff]   ;;  %v7303_v13 = vld [vmem:[%s10030_s26 + $0x3d8] sm:$0xff]  }
  0x3a   : > { %2766 = vmatmul.mubr.f32.vlgmr.msra.gmra.mrb[0].mxu1 %v2309_v29  ;;  %8923 = vmatpush3.bf16.msra.mxu0 %v7212_v51  ;;  %v7269_v29 = vld [vmem:[%s10030_s26 + $0x2c8] sm:$0xff]   ;;  %v7274_v51 = vld [vmem:[%s10030_s26 + $0x2f0] sm:$0xff]  }
  0x3b   : > { %8955 = vmatpush3.bf16.msra.mxu1 %v7228_v52  ;;  %8925 = vmatprep.subr.bf16.mxu0 %v7221_v53  ;;  %v2344_v30 = vcombine.high %v10117_v24, %v10117_v24  ;;  %v218_v52 = vld [vmem:[%s10025_s22 + $0x18] sm:$0xff]  ;;  %v7250_v53 = vld [vmem:[%s10030_s26 + $0x230] sm:$0xff]  }
  0x3c   : > { %8957 = vmatprep.subr.bf16.mxu1 %v7237_v54  ;;  %2835 = vmatprep.mubr.f32.mxu0 %v2327_v55  ;;  %v7266_v54 = vld [vmem:[%s10030_s26 + $0x2b0] sm:$0xff]   ;;  %v7259_v55 = vld [vmem:[%s10030_s26 + $0x278] sm:$0xff]  }
  0x3d   : > { %2905 = vmatprep.mubr.f32.mxu1 %v2328_v56  ;;  %v7275_v56 = vld [vmem:[%s10030_s26 + $0x2f8] sm:$0xff]  }
  0x3e   : > { %8927 = vmatpush3.bf16.msra.mxu0 %v7213_v57  ;;  %v2346_v57 = vcombine.high %v218_v52, %v218_v52 }
  0x3f   : > { %8959 = vmatpush3.bf16.msra.mxu1 %v7229_v58  ;;  %8929 = vmatprep.subr.bf16.mxu0 %v7222_v59  ;;  %v7251_v58 = vld [vmem:[%s10030_s26 + $0x238] sm:$0xff]  }
  0x40   : > { %8961 = vmatprep.subr.bf16.mxu1 %v7238_v60  ;;  %v7267_v59 = vld [vmem:[%s10030_s26 + $0x2b8] sm:$0xff]   ;;  %v7284_v60 = vld [vmem:[%s10030_s26 + $0x340] sm:$0xff]  }
  0x42   : > { %8931 = vmatpush3.bf16.msra.mxu0 %v7214_v61  ;;  %v7300_v61 = vld [vmem:[%s10030_s26 + $0x3c0] sm:$0xff]  }
  0x43   : > { %8963 = vmatpush3.bf16.msra.mxu1 %v7230_v62  ;;  %8933 = vmatprep.subr.bf16.mxu0 %v7223_v63  ;;  %v10162_v62 = vrot.slane %v218_v52, %v10045_v18  ;;  %v10165_v63 = vrot.slane %v2346_v57, %v10045_v18  ;;  %v7335_v52 = vld [vmem:[%s10030_s26 + $0x4d8] sm:$0xff]   ;;  %v7312_v57 = vld [vmem:[%s10030_s26 + $0x420] sm:$0xff]  }
  0x44   : > { %8965 = vmatprep.subr.bf16.mxu1 %v7239_v0  ;;  %v7276_v0 = vld [vmem:[%s10030_s26 + $0x300] sm:$0xff]  }
  0x46   : > { %8935 = vmatpush3.bf16.msra.mxu0 %v7215_v1  ;;  %v7292_v1 = vld [vmem:[%s10030_s26 + $0x380] sm:$0xff]  }
  0x47   : > { %8967 = vmatpush3.bf16.msra.mxu1 %v7231_v2  ;;  %8937 = vmatprep.subr.bf16.mxu0 %v7224_v3  ;;  %v7285_v2 = vld [vmem:[%s10030_s26 + $0x348] sm:$0xff]  }
  0x48   : > { %8969 = vmatprep.subr.bf16.mxu1 %v7240_v4  ;;  %v7301_v3 = vld [vmem:[%s10030_s26 + $0x3c8] sm:$0xff]   ;;  %v2361_v4 = vcombine.high %v10162_v62, %v10162_v62 }
  0x4a   : > { %8939 = vmatpush3.bf16.msra.mxu0 %v7216_v5  ;;  %v2362_v5 = vcombine.high %v10165_v63, %v10165_v63 }
  0x4b   : > { %8971 = vmatpush3.bf16.msra.mxu1 %v7232_v6  ;;  %8941 = vmatprep.subr.bf16.mxu0 %v7225_v7  ;;  %v7277_v6 = vld [vmem:[%s10030_s26 + $0x308] sm:$0xff]  }
  0x4c   : > { %8973 = vmatprep.subr.bf16.mxu1 %v7241_v8  ;;  %v7293_v7 = vld [vmem:[%s10030_s26 + $0x388] sm:$0xff]   ;;  %v7286_v8 = vld [vmem:[%s10030_s26 + $0x350] sm:$0xff]  }
  0x4e   : > { %8943 = vmatpush3.bf16.msra.mxu0 %v7217_v9  ;;  %v7302_v9 = vld [vmem:[%s10030_s26 + $0x3d0] sm:$0xff]  }
  0x4f   : > { %8975 = vmatpush3.bf16.msra.mxu1 %v7233_v10  ;;  %8945 = vmatprep.subr.bf16.mxu0 %v7226_v11  ;;  %v7278_v10 = vld [vmem:[%s10030_s26 + $0x310] sm:$0xff]  }
  0x50   : > { %8977 = vmatprep.subr.bf16.mxu1 %v7242_v12  ;;  %v7294_v11 = vld [vmem:[%s10030_s26 + $0x390] sm:$0xff]   ;;  %v7287_v12 = vld [vmem:[%s10030_s26 + $0x358] sm:$0xff]  }
  0x52   : > { %8947 = vmatpush3.bf16.msra.mxu0 %v7218_v14  ;;  %v7279_v14 = vld [vmem:[%s10030_s26 + $0x318] sm:$0xff]  }
  0x53   : > { %8979 = vmatpush3.bf16.msra.mxu1 %v7234_v15  ;;  %8949 = vmatprep.subr.bf16.mxu0 %v7227_v16  ;;  %v7295_v15 = vld [vmem:[%s10030_s26 + $0x398] sm:$0xff]   ;;  %v7288_v16 = vld [vmem:[%s10030_s26 + $0x360] sm:$0xff]  }
  0x54   : > { %8981 = vmatprep.subr.bf16.mxu1 %v7243_v17  ;;  %v7304_v17 = vld [vmem:[%s10030_s26 + $0x3e0] sm:$0xff]  }
  0x56   : > { %8951 = vmatpush3.bf16.msra.mxu0 %v7219_v20  ;;  %v7296_v20 = vld [vmem:[%s10030_s26 + $0x3a0] sm:$0xff]  }
  0x57   : > { %8983 = vmatpush3.bf16.msra.mxu1 %v7235_v21  ;;  %8985 = vmatprep.subr.bf16.mxu0 %v7252_v22  ;;  %v7289_v21 = vld [vmem:[%s10030_s26 + $0x368] sm:$0xff]  }
  0x58   : > { %9017 = vmatprep.subr.bf16.mxu1 %v7268_v23  ;;  %v7305_v22 = vld [vmem:[%s10030_s26 + $0x3e8] sm:$0xff]  }
  0x59   : > { %2836 = vmatmul.mubr.f32.vlgmr.msra.gmra.mrb[2].mxu0 %v10074_v49  ;;  %v7265_v49 = vld [vmem:[%s10030_s26 + $0x2a8] sm:$0xff]  }
  0x5a   : > { %2906 = vmatmul.mubr.f32.vlgmr.msra.gmra.mrb[2].mxu1 %v10077_v50  ;;  %8987 = vmatpush3.bf16.msra.mxu0 %v7244_v26  ;;  %v7258_v50 = vld [vmem:[%s10030_s26 + $0x270] sm:$0xff]   ;;  %v7281_v23 = vld [vmem:[%s10030_s26 + $0x328] sm:$0xff]  }
  0x5b   : > { %9019 = vmatpush3.bf16.msra.mxu1 %v7260_v27  ;;  %8989 = vmatprep.subr.bf16.mxu0 %v7253_v28  ;;  %v7306_v26 = vld [vmem:[%s10030_s26 + $0x3f0] sm:$0xff]   ;;  %v219_v27 = vld [vmem:[%s10025_s22 + $0x20] sm:$0xff] }
  0x5c   : > { %9021 = vmatprep.subr.bf16.mxu1 %v7269_v29  ;;  %2975 = vmatprep.mubr.f32.mxu0 %v2344_v30  ;;  %v7282_v28 = vld [vmem:[%s10030_s26 + $0x330] sm:$0xff]   ;;  %v7291_v30 = vld [vmem:[%s10030_s26 + $0x378] sm:$0xff]  }
  0x5d   : > { %3045 = vmatprep.mubr.f32.mxu1 %v2345_v31  ;;  %v7298_v29 = vld [vmem:[%s10030_s26 + $0x3b0] sm:$0xff]   ;;  %v7307_v31 = vld [vmem:[%s10030_s26 + $0x3f8] sm:$0xff]  }
  0x5e   : > { %8991 = vmatpush3.bf16.msra.mxu0 %v7245_v32  ;;  %v2363_v32 = vcombine.high %v219_v27, %v219_v27 }
  0x5f   : > { %9023 = vmatpush3.bf16.msra.mxu1 %v7261_v33  ;;  %8993 = vmatprep.subr.bf16.mxu0 %v7254_v34  ;;  %v7283_v33 = vld [vmem:[%s10030_s26 + $0x338] sm:$0xff]  }
  0x60   : > { %9025 = vmatprep.subr.bf16.mxu1 %v7270_v35  ;;  %v7299_v34 = vld [vmem:[%s10030_s26 + $0x3b8] sm:$0xff]   ;;  %v7316_v35 = vld [vmem:[%s10030_s26 + $0x440] sm:$0xff]  }
  0x62   : > { %8995 = vmatpush3.bf16.msra.mxu0 %v7246_v36  ;;  %v7332_v36 = vld [vmem:[%s10030_s26 + $0x4c0] sm:$0xff]  }
  0x63   : > { %9027 = vmatpush3.bf16.msra.mxu1 %v7262_v37  ;;  %8997 = vmatprep.subr.bf16.mxu0 %v7255_v38  ;;  %v10207_v37 = vrot.slane %v219_v27, %v10045_v18  ;;  %v10210_v38 = vrot.slane %v2363_v32, %v10045_v18  ;;  %v7367_v27 = vld [vmem:[%s10030_s26 + $0x5d8] sm:$0xff]   ;;  %v7344_v32 = vld [vmem:[%s10030_s26 + $0x520] sm:$0xff]  }
  0x64   : > { %9029 = vmatprep.subr.bf16.mxu1 %v7271_v39  ;;  %v7308_v39 = vld [vmem:[%s10030_s26 + $0x400] sm:$0xff]  }
  0x66   : > { %8999 = vmatpush3.bf16.msra.mxu0 %v7247_v40  ;;  %v7324_v40 = vld [vmem:[%s10030_s26 + $0x480] sm:$0xff]  }
  0x67   : > { %9031 = vmatpush3.bf16.msra.mxu1 %v7263_v41  ;;  %9001 = vmatprep.subr.bf16.mxu0 %v7256_v42  ;;  %v7317_v41 = vld [vmem:[%s10030_s26 + $0x448] sm:$0xff]  }
  0x68   : > { %9033 = vmatprep.subr.bf16.mxu1 %v7272_v43  ;;  %v7333_v42 = vld [vmem:[%s10030_s26 + $0x4c8] sm:$0xff]   ;;  %v2378_v43 = vcombine.high %v10207_v37, %v10207_v37 }
  0x6a   : > { %9003 = vmatpush3.bf16.msra.mxu0 %v7248_v44  ;;  %v2379_v44 = vcombine.high %v10210_v38, %v10210_v38 }
  0x6b   : > { %9035 = vmatpush3.bf16.msra.mxu1 %v7264_v45  ;;  %9005 = vmatprep.subr.bf16.mxu0 %v7257_v46  ;;  %v7309_v45 = vld [vmem:[%s10030_s26 + $0x408] sm:$0xff]  }
  0x6c   : > { %9037 = vmatprep.subr.bf16.mxu1 %v7273_v47  ;;  %v7325_v46 = vld [vmem:[%s10030_s26 + $0x488] sm:$0xff]   ;;  %v7318_v47 = vld [vmem:[%s10030_s26 + $0x450] sm:$0xff]  }
  0x6e   : > { %9007 = vmatpush3.bf16.msra.mxu0 %v7249_v48  ;;  %v7334_v48 = vld [vmem:[%s10030_s26 + $0x4d0] sm:$0xff]  }
  0x6f   : > { %9039 = vmatpush3.bf16.msra.mxu1 %v7265_v49  ;;  %9009 = vmatprep.subr.bf16.mxu0 %v7258_v50  ;;  %v7310_v49 = vld [vmem:[%s10030_s26 + $0x410] sm:$0xff]  }
  0x70   : > { %9041 = vmatprep.subr.bf16.mxu1 %v7274_v51  ;;  %v7326_v50 = vld [vmem:[%s10030_s26 + $0x490] sm:$0xff]   ;;  %v7319_v51 = vld [vmem:[%s10030_s26 + $0x458] sm:$0xff]  }
  0x72   : > { %9011 = vmatpush3.bf16.msra.mxu0 %v7250_v53  ;;  %v7311_v53 = vld [vmem:[%s10030_s26 + $0x418] sm:$0xff]  }
  0x73   : > { %9043 = vmatpush3.bf16.msra.mxu1 %v7266_v54  ;;  %9013 = vmatprep.subr.bf16.mxu0 %v7259_v55  ;;  %v7327_v54 = vld [vmem:[%s10030_s26 + $0x498] sm:$0xff]   ;;  %v7320_v55 = vld [vmem:[%s10030_s26 + $0x460] sm:$0xff]  }
  0x74   : > { %9045 = vmatprep.subr.bf16.mxu1 %v7275_v56  ;;  %v7336_v56 = vld [vmem:[%s10030_s26 + $0x4e0] sm:$0xff]  }
  0x76   : > { %9015 = vmatpush3.bf16.msra.mxu0 %v7251_v58  ;;  %v7328_v58 = vld [vmem:[%s10030_s26 + $0x4a0] sm:$0xff]  }
  0x77   : > { %9047 = vmatpush3.bf16.msra.mxu1 %v7267_v59  ;;  %9049 = vmatprep.subr.bf16.mxu0 %v7284_v60  ;;  %v7321_v59 = vld [vmem:[%s10030_s26 + $0x468] sm:$0xff]  }
  0x78   : > { %9081 = vmatprep.subr.bf16.mxu1 %v7300_v61  ;;  %v7337_v60 = vld [vmem:[%s10030_s26 + $0x4e8] sm:$0xff]  }
  0x79   : > { %2976 = vmatmul.mubr.f32.vlgmr.msra.gmra.mrb[4].mxu0 %v10117_v24  ;;  %v7297_v24 = vld [vmem:[%s10030_s26 + $0x3a8] sm:$0xff]  }
  0x7a   : > { %3046 = vmatmul.mubr.f32.vlgmr.msra.gmra.mrb[4].mxu1 %v10120_v25  ;;  %9051 = vmatpush3.bf16.msra.mxu0 %v7276_v0  ;;  %v7290_v25 = vld [vmem:[%s10030_s26 + $0x370] sm:$0xff]   ;;  %v7313_v61 = vld [vmem:[%s10030_s26 + $0x428] sm:$0xff]  }
  0x7b   : > { %9083 = vmatpush3.bf16.msra.mxu1 %v7292_v1  ;;  %9053 = vmatprep.subr.bf16.mxu0 %v7285_v2  ;;  %v7338_v0 = vld [vmem:[%s10030_s26 + $0x4f0] sm:$0xff]   ;;  %v220_v1 = vld [vmem:[%s10025_s22 + $0x28] sm:$0xff] }
  0x7c   : > { %9085 = vmatprep.subr.bf16.mxu1 %v7301_v3  ;;  %3115 = vmatprep.mubr.f32.mxu0 %v2361_v4  ;;  %v7314_v2 = vld [vmem:[%s10030_s26 + $0x430] sm:$0xff]   ;;  %v7323_v4 = vld [vmem:[%s10030_s26 + $0x478] sm:$0xff]  }
  0x7d   : > { %3185 = vmatprep.mubr.f32.mxu1 %v2362_v5  ;;  %v7330_v3 = vld [vmem:[%s10030_s26 + $0x4b0] sm:$0xff]   ;;  %v7339_v5 = vld [vmem:[%s10030_s26 + $0x4f8] sm:$0xff]  }
  0x7e   : > { %9055 = vmatpush3.bf16.msra.mxu0 %v7277_v6  ;;  %v2380_v6 = vcombine.high %v220_v1, %v220_v1 }
  0x7f   : > { %9087 = vmatpush3.bf16.msra.mxu1 %v7293_v7  ;;  %9057 = vmatprep.subr.bf16.mxu0 %v7286_v8  ;;  %v7315_v7 = vld [vmem:[%s10030_s26 + $0x438] sm:$0xff]  }
  0x80   : > { %9089 = vmatprep.subr.bf16.mxu1 %v7302_v9  ;;  %v7331_v8 = vld [vmem:[%s10030_s26 + $0x4b8] sm:$0xff]   ;;  %v7348_v9 = vld [vmem:[%s10030_s26 + $0x540] sm:$0xff]  }
  0x82   : > { %9059 = vmatpush3.bf16.msra.mxu0 %v7278_v10  ;;  %v7364_v10 = vld [vmem:[%s10030_s26 + $0x5c0] sm:$0xff]  }
  0x83   : > { %9091 = vmatpush3.bf16.msra.mxu1 %v7294_v11  ;;  %9061 = vmatprep.subr.bf16.mxu0 %v7287_v12  ;;  %v10252_v11 = vrot.slane %v220_v1, %v10045_v18  ;;  %v10255_v12 = vrot.slane %v2380_v6, %v10045_v18  ;;  %v7399_v1 = vld [vmem:[%s10030_s26 + $0x6d8] sm:$0xff]   ;;  %v7376_v6 = vld [vmem:[%s10030_s26 + $0x620] sm:$0xff]  }
  0x84   : > { %9093 = vmatprep.subr.bf16.mxu1 %v7303_v13  ;;  %v7340_v13 = vld [vmem:[%s10030_s26 + $0x500] sm:$0xff]  }
  0x86   : > { %9063 = vmatpush3.bf16.msra.mxu0 %v7279_v14  ;;  %v7356_v14 = vld [vmem:[%s10030_s26 + $0x580] sm:$0xff]  }
  0x87   : > { %9095 = vmatpush3.bf16.msra.mxu1 %v7295_v15  ;;  %9065 = vmatprep.subr.bf16.mxu0 %v7288_v16  ;;  %v7349_v15 = vld [vmem:[%s10030_s26 + $0x548] sm:$0xff]  }
  0x88   : > { %9097 = vmatprep.subr.bf16.mxu1 %v7304_v17  ;;  %v7365_v16 = vld [vmem:[%s10030_s26 + $0x5c8] sm:$0xff]   ;;  %v2395_v17 = vcombine.high %v10252_v11, %v10252_v11 }
  0x8a   : > { %9067 = vmatpush3.bf16.msra.mxu0 %v7280_v19  ;;  %v2396_v19 = vcombine.high %v10255_v12, %v10255_v12 }
  0x8b   : > { %9099 = vmatpush3.bf16.msra.mxu1 %v7296_v20  ;;  %9069 = vmatprep.subr.bf16.mxu0 %v7289_v21  ;;  %v7341_v20 = vld [vmem:[%s10030_s26 + $0x508] sm:$0xff]  }
  0x8c   : > { %9101 = vmatprep.subr.bf16.mxu1 %v7305_v22  ;;  %v7357_v21 = vld [vmem:[%s10030_s26 + $0x588] sm:$0xff]   ;;  %v7350_v22 = vld [vmem:[%s10030_s26 + $0x550] sm:$0xff]  }
  0x8e   : > { %9071 = vmatpush3.bf16.msra.mxu0 %v7281_v23  ;;  %v7366_v23 = vld [vmem:[%s10030_s26 + $0x5d0] sm:$0xff]  }
  0x8f   : > { %9103 = vmatpush3.bf16.msra.mxu1 %v7297_v24  ;;  %9073 = vmatprep.subr.bf16.mxu0 %v7290_v25  ;;  %v7342_v24 = vld [vmem:[%s10030_s26 + $0x510] sm:$0xff]  }
  0x90   : > { %9105 = vmatprep.subr.bf16.mxu1 %v7306_v26  ;;  %v7358_v25 = vld [vmem:[%s10030_s26 + $0x590] sm:$0xff]   ;;  %v7351_v26 = vld [vmem:[%s10030_s26 + $0x558] sm:$0xff]  }
  0x92   : > { %9075 = vmatpush3.bf16.msra.mxu0 %v7282_v28  ;;  %v7343_v28 = vld [vmem:[%s10030_s26 + $0x518] sm:$0xff]  }
  0x93   : > { %9107 = vmatpush3.bf16.msra.mxu1 %v7298_v29  ;;  %9077 = vmatprep.subr.bf16.mxu0 %v7291_v30  ;;  %v7359_v29 = vld [vmem:[%s10030_s26 + $0x598] sm:$0xff]   ;;  %v7352_v30 = vld [vmem:[%s10030_s26 + $0x560] sm:$0xff]  }
  0x94   : > { %9109 = vmatprep.subr.bf16.mxu1 %v7307_v31  ;;  %v7368_v31 = vld [vmem:[%s10030_s26 + $0x5e0] sm:$0xff]  }
  0x96   : > { %9079 = vmatpush3.bf16.msra.mxu0 %v7283_v33  ;;  %v7360_v33 = vld [vmem:[%s10030_s26 + $0x5a0] sm:$0xff]  }
  0x97   : > { %9111 = vmatpush3.bf16.msra.mxu1 %v7299_v34  ;;  %9113 = vmatprep.subr.bf16.mxu0 %v7316_v35  ;;  %v7353_v34 = vld [vmem:[%s10030_s26 + $0x568] sm:$0xff]  }
  0x98   : > { %9145 = vmatprep.subr.bf16.mxu1 %v7332_v36  ;;  %v7369_v35 = vld [vmem:[%s10030_s26 + $0x5e8] sm:$0xff]  }
  0x99   : > { %3116 = vmatmul.mubr.f32.vlgmr.msra.gmra.mrb[6].mxu0 %v10162_v62  ;;  %v7329_v62 = vld [vmem:[%s10030_s26 + $0x4a8] sm:$0xff]  }
  0x9a   : > { %3186 = vmatmul.mubr.f32.vlgmr.msra.gmra.mrb[6].mxu1 %v10165_v63  ;;  %9115 = vmatpush3.bf16.msra.mxu0 %v7308_v39  ;;  %v7322_v63 = vld [vmem:[%s10030_s26 + $0x470] sm:$0xff]   ;;  %v7345_v36 = vld [vmem:[%s10030_s26 + $0x528] sm:$0xff]  }
  0x9b   : > { %9147 = vmatpush3.bf16.msra.mxu1 %v7324_v40  ;;  %9117 = vmatprep.subr.bf16.mxu0 %v7317_v41  ;;  %v7370_v39 = vld [vmem:[%s10030_s26 + $0x5f0] sm:$0xff]  }
  0x9c   : > { %9149 = vmatprep.subr.bf16.mxu1 %v7333_v42  ;;  %3255 = vmatprep.mubr.f32.mxu0 %v2378_v43  ;;  %v221_v40 = vld [vmem:[%s10025_s22 + $0x30] sm:$0xff]  ;;  %v7355_v43 = vld [vmem:[%s10030_s26 + $0x578] sm:$0xff]  }
  0x9d   : > { %3325 = vmatprep.mubr.f32.mxu1 %v2379_v44  ;;  %v7346_v41 = vld [vmem:[%s10030_s26 + $0x530] sm:$0xff]   ;;  %v7371_v44 = vld [vmem:[%s10030_s26 + $0x5f8] sm:$0xff]  }
  0x9e   : > { %9119 = vmatpush3.bf16.msra.mxu0 %v7309_v45  ;;  %v7362_v42 = vld [vmem:[%s10030_s26 + $0x5b0] sm:$0xff]   ;;  %v2397_v45 = vcombine.high %v221_v40, %v221_v40 }
  0x9f   : > { %9151 = vmatpush3.bf16.msra.mxu1 %v7325_v46  ;;  %9121 = vmatprep.subr.bf16.mxu0 %v7318_v47  ;;  %v7347_v46 = vld [vmem:[%s10030_s26 + $0x538] sm:$0xff]  }
  0xa0   : > { %9153 = vmatprep.subr.bf16.mxu1 %v7334_v48  ;;  %v7363_v47 = vld [vmem:[%s10030_s26 + $0x5b8] sm:$0xff]   ;;  %v7380_v48 = vld [vmem:[%s10030_s26 + $0x640] sm:$0xff]  }
  0xa2   : > { %9123 = vmatpush3.bf16.msra.mxu0 %v7310_v49  ;;  %v7396_v49 = vld [vmem:[%s10030_s26 + $0x6c0] sm:$0xff]  }
  0xa3   : > { %9155 = vmatpush3.bf16.msra.mxu1 %v7326_v50  ;;  %9125 = vmatprep.subr.bf16.mxu0 %v7319_v51  ;;  %v10297_v50 = vrot.slane %v221_v40, %v10045_v18  ;;  %v10300_v51 = vrot.slane %v2397_v45, %v10045_v18  ;;  %v7431_v40 = vld [vmem:[%s10030_s26 + $0x7d8] sm:$0xff]   ;;  %v7408_v45 = vld [vmem:[%s10030_s26 + $0x720] sm:$0xff]  }
  0xa4   : > { %9157 = vmatprep.subr.bf16.mxu1 %v7335_v52  ;;  %v7372_v52 = vld [vmem:[%s10030_s26 + $0x600] sm:$0xff]  }
  0xa6   : > { %9127 = vmatpush3.bf16.msra.mxu0 %v7311_v53  ;;  %v7388_v53 = vld [vmem:[%s10030_s26 + $0x680] sm:$0xff]  }
  0xa7   : > { %9159 = vmatpush3.bf16.msra.mxu1 %v7327_v54  ;;  %9129 = vmatprep.subr.bf16.mxu0 %v7320_v55  ;;  %v7381_v54 = vld [vmem:[%s10030_s26 + $0x648] sm:$0xff]  }
  0xa8   : > { %9161 = vmatprep.subr.bf16.mxu1 %v7336_v56  ;;  %v7397_v55 = vld [vmem:[%s10030_s26 + $0x6c8] sm:$0xff]   ;;  %v2412_v56 = vcombine.high %v10297_v50, %v10297_v50 }
  0xaa   : > { %9131 = vmatpush3.bf16.msra.mxu0 %v7312_v57  ;;  %v2413_v57 = vcombine.high %v10300_v51, %v10300_v51 }
  0xab   : > { %9163 = vmatpush3.bf16.msra.mxu1 %v7328_v58  ;;  %9133 = vmatprep.subr.bf16.mxu0 %v7321_v59  ;;  %v7373_v58 = vld [vmem:[%s10030_s26 + $0x608] sm:$0xff]  }
  0xac   : > { %9165 = vmatprep.subr.bf16.mxu1 %v7337_v60  ;;  %v7389_v59 = vld [vmem:[%s10030_s26 + $0x688] sm:$0xff]   ;;  %v7382_v60 = vld [vmem:[%s10030_s26 + $0x650] sm:$0xff]  }
  0xae   : > { %9135 = vmatpush3.bf16.msra.mxu0 %v7313_v61  ;;  %v7398_v61 = vld [vmem:[%s10030_s26 + $0x6d0] sm:$0xff]  }
  0xaf   : > { %9167 = vmatpush3.bf16.msra.mxu1 %v7329_v62  ;;  %9137 = vmatprep.subr.bf16.mxu0 %v7322_v63  ;;  %v7374_v62 = vld [vmem:[%s10030_s26 + $0x610] sm:$0xff]  }
  0xb0   : > { %9169 = vmatprep.subr.bf16.mxu1 %v7338_v0  ;;  %v7390_v63 = vld [vmem:[%s10030_s26 + $0x690] sm:$0xff]   ;;  %v7383_v0 = vld [vmem:[%s10030_s26 + $0x658] sm:$0xff]  }
  0xb2   : > { %9139 = vmatpush3.bf16.msra.mxu0 %v7314_v2  ;;  %v7375_v2 = vld [vmem:[%s10030_s26 + $0x618] sm:$0xff]  }
  0xb3   : > { %9171 = vmatpush3.bf16.msra.mxu1 %v7330_v3  ;;  %9141 = vmatprep.subr.bf16.mxu0 %v7323_v4  ;;  %v7391_v3 = vld [vmem:[%s10030_s26 + $0x698] sm:$0xff]   ;;  %v7384_v4 = vld [vmem:[%s10030_s26 + $0x660] sm:$0xff]  }
  0xb4   : > { %9173 = vmatprep.subr.bf16.mxu1 %v7339_v5  ;;  %v7400_v5 = vld [vmem:[%s10030_s26 + $0x6e0] sm:$0xff]  }
  0xb6   : > { %9143 = vmatpush3.bf16.msra.mxu0 %v7315_v7  ;;  %v7392_v7 = vld [vmem:[%s10030_s26 + $0x6a0] sm:$0xff]  }
  0xb7   : > { %9175 = vmatpush3.bf16.msra.mxu1 %v7331_v8  ;;  %9177 = vmatprep.subr.bf16.mxu0 %v7348_v9  ;;  %v7385_v8 = vld [vmem:[%s10030_s26 + $0x668] sm:$0xff]  }
  0xb8   : > { %9209 = vmatprep.subr.bf16.mxu1 %v7364_v10  ;;  %v7401_v9 = vld [vmem:[%s10030_s26 + $0x6e8] sm:$0xff]  }
  0xb9   : > { %3256 = vmatmul.mubr.f32.vlgmr.msra.gmra.mrb[8].mxu0 %v10207_v37  ;;  %v7361_v37 = vld [vmem:[%s10030_s26 + $0x5a8] sm:$0xff]  }
  0xba   : > { %3326 = vmatmul.mubr.f32.vlgmr.msra.gmra.mrb[8].mxu1 %v10210_v38  ;;  %9179 = vmatpush3.bf16.msra.mxu0 %v7340_v13  ;;  %v7354_v38 = vld [vmem:[%s10030_s26 + $0x570] sm:$0xff]   ;;  %v7377_v10 = vld [vmem:[%s10030_s26 + $0x628] sm:$0xff]  }
  0xbb   : > { %9211 = vmatpush3.bf16.msra.mxu1 %v7356_v14  ;;  %9181 = vmatprep.subr.bf16.mxu0 %v7349_v15  ;;  %v7402_v13 = vld [vmem:[%s10030_s26 + $0x6f0] sm:$0xff]   ;;  %v222_v14 = vld [vmem:[%s10025_s22 + $0x38] sm:$0xff] }
  0xbc   : > { %9213 = vmatprep.subr.bf16.mxu1 %v7365_v16  ;;  %3395 = vmatprep.mubr.f32.mxu0 %v2395_v17  ;;  %v7378_v15 = vld [vmem:[%s10030_s26 + $0x630] sm:$0xff]   ;;  %v7387_v17 = vld [vmem:[%s10030_s26 + $0x678] sm:$0xff]  }
  0xbd   : > { %3465 = vmatprep.mubr.f32.mxu1 %v2396_v19  ;;  %v7394_v16 = vld [vmem:[%s10030_s26 + $0x6b0] sm:$0xff]   ;;  %v7403_v19 = vld [vmem:[%s10030_s26 + $0x6f8] sm:$0xff]  }
  0xbe   : > { %9183 = vmatpush3.bf16.msra.mxu0 %v7341_v20  ;;  %v2414_v20 = vcombine.high %v222_v14, %v222_v14 }
  0xbf   : > { %9215 = vmatpush3.bf16.msra.mxu1 %v7357_v21  ;;  %9185 = vmatprep.subr.bf16.mxu0 %v7350_v22  ;;  %v7379_v21 = vld [vmem:[%s10030_s26 + $0x638] sm:$0xff]  }
  0xc0   : > { %9217 = vmatprep.subr.bf16.mxu1 %v7366_v23  ;;  %v7395_v22 = vld [vmem:[%s10030_s26 + $0x6b8] sm:$0xff]   ;;  %v7412_v23 = vld [vmem:[%s10030_s26 + $0x740] sm:$0xff]  }
  0xc2   : > { %9187 = vmatpush3.bf16.msra.mxu0 %v7342_v24  ;;  %v7428_v24 = vld [vmem:[%s10030_s26 + $0x7c0] sm:$0xff]  }
  0xc3   : > { %9219 = vmatpush3.bf16.msra.mxu1 %v7358_v25  ;;  %9189 = vmatprep.subr.bf16.mxu0 %v7351_v26  ;;  %v10342_v25 = vrot.slane %v222_v14, %v10045_v18  ;;  %v10345_v26 = vrot.slane %v2414_v20, %v10045_v18  ;;  %v7437_v14 = vld [vmem:[%s10030_s26 + $0x808] sm:$0xff]   ;;  %v7454_v20 = vld [vmem:[%s10030_s26 + $0x890] sm:$0xff]  }
  0xc4   : > { %9221 = vmatprep.subr.bf16.mxu1 %v7367_v27  ;;  %v7404_v27 = vld [vmem:[%s10030_s26 + $0x700] sm:$0xff]  }
  0xc6   : > { %9191 = vmatpush3.bf16.msra.mxu0 %v7343_v28  ;;  %v7420_v28 = vld [vmem:[%s10030_s26 + $0x780] sm:$0xff]  }
  0xc7   : > { %9223 = vmatpush3.bf16.msra.mxu1 %v7359_v29  ;;  %9193 = vmatprep.subr.bf16.mxu0 %v7352_v30  ;;  %v7413_v29 = vld [vmem:[%s10030_s26 + $0x748] sm:$0xff]  }
  0xc8   : > { %9225 = vmatprep.subr.bf16.mxu1 %v7368_v31  ;;  %v7429_v30 = vld [vmem:[%s10030_s26 + $0x7c8] sm:$0xff]   ;;  %v2429_v31 = vcombine.high %v10342_v25, %v10342_v25 }
  0xca   : > { %9195 = vmatpush3.bf16.msra.mxu0 %v7344_v32  ;;  %v2430_v32 = vcombine.high %v10345_v26, %v10345_v26 }
  0xcb   : > { %9227 = vmatpush3.bf16.msra.mxu1 %v7360_v33  ;;  %9197 = vmatprep.subr.bf16.mxu0 %v7353_v34  ;;  %v7405_v33 = vld [vmem:[%s10030_s26 + $0x708] sm:$0xff]  }
  0xcc   : > { %9229 = vmatprep.subr.bf16.mxu1 %v7369_v35  ;;  %v7421_v34 = vld [vmem:[%s10030_s26 + $0x788] sm:$0xff]   ;;  %v7414_v35 = vld [vmem:[%s10030_s26 + $0x750] sm:$0xff]  }
  0xce   : > { %9199 = vmatpush3.bf16.msra.mxu0 %v7345_v36  ;;  %v7430_v36 = vld [vmem:[%s10030_s26 + $0x7d0] sm:$0xff]  }
  0xcf   : > { %9231 = vmatpush3.bf16.msra.mxu1 %v7361_v37  ;;  %9201 = vmatprep.subr.bf16.mxu0 %v7354_v38  ;;  %v7406_v37 = vld [vmem:[%s10030_s26 + $0x710] sm:$0xff]  }
  0xd0   : > { %9233 = vmatprep.subr.bf16.mxu1 %v7370_v39  ;;  %v7422_v38 = vld [vmem:[%s10030_s26 + $0x790] sm:$0xff]   ;;  %v7415_v39 = vld [vmem:[%s10030_s26 + $0x758] sm:$0xff]  }
  0xd2   : > { %9203 = vmatpush3.bf16.msra.mxu0 %v7346_v41  ;;  %v7407_v41 = vld [vmem:[%s10030_s26 + $0x718] sm:$0xff]  }
  0xd3   : > { %9235 = vmatpush3.bf16.msra.mxu1 %v7362_v42  ;;  %9205 = vmatprep.subr.bf16.mxu0 %v7355_v43  ;;  %v7423_v42 = vld [vmem:[%s10030_s26 + $0x798] sm:$0xff]   ;;  %v7416_v43 = vld [vmem:[%s10030_s26 + $0x760] sm:$0xff]  }
  0xd4   : > { %9237 = vmatprep.subr.bf16.mxu1 %v7371_v44  ;;  %v7432_v44 = vld [vmem:[%s10030_s26 + $0x7e0] sm:$0xff]  }
  0xd6   : > { %9207 = vmatpush3.bf16.msra.mxu0 %v7347_v46  ;;  %v7424_v46 = vld [vmem:[%s10030_s26 + $0x7a0] sm:$0xff]  }
  0xd7   : > { %9239 = vmatpush3.bf16.msra.mxu1 %v7363_v47  ;;  %9241 = vmatprep.subr.bf16.mxu0 %v7380_v48  ;;  %v7417_v47 = vld [vmem:[%s10030_s26 + $0x768] sm:$0xff]  }
  0xd8   : > { %9273 = vmatprep.subr.bf16.mxu1 %v7396_v49  ;;  %v7433_v48 = vld [vmem:[%s10030_s26 + $0x7e8] sm:$0xff]  }
  0xd9   : > { %3396 = vmatmul.mubr.f32.vlgmr.msra.gmra.mrb[10].mxu0 %v10252_v11  ;;  %v7393_v11 = vld [vmem:[%s10030_s26 + $0x6a8] sm:$0xff]  }
  0xda   : > { %3466 = vmatmul.mubr.f32.vlgmr.msra.gmra.mrb[10].mxu1 %v10255_v12  ;;  %9243 = vmatpush3.bf16.msra.mxu0 %v7372_v52  ;;  %v7386_v12 = vld [vmem:[%s10030_s26 + $0x670] sm:$0xff]   ;;  %v7409_v49 = vld [vmem:[%s10030_s26 + $0x728] sm:$0xff]  }
  0xdb   : > { %9275 = vmatpush3.bf16.msra.mxu1 %v7388_v53  ;;  %9245 = vmatprep.subr.bf16.mxu0 %v7381_v54  ;;  %v7418_v53 = vld [vmem:[%s10030_s26 + $0x770] sm:$0xff]  }
  0xdc   : > { %9277 = vmatprep.subr.bf16.mxu1 %v7397_v55  ;;  %3535 = vmatprep.mubr.f32.mxu0 %v2412_v56  ;;  %v7434_v54 = vld [vmem:[%s10030_s26 + $0x7f0] sm:$0xff]  }
  0xdd   : > { %3605 = vmatprep.mubr.f32.mxu1 %v2413_v57  ;;  %v223_v57 = vld [vmem:[%s10025_s22 + $0x40] sm:$0xff] }
  0xde   : > { %9247 = vmatpush3.bf16.msra.mxu0 %v7373_v58 }
  0xdf   : > { %9279 = vmatpush3.bf16.msra.mxu1 %v7389_v59  ;;  %9249 = vmatprep.subr.bf16.mxu0 %v7382_v60  ;;  %v7410_v60 = vld [vmem:[%s10030_s26 + $0x730] sm:$0xff]  }
  0xe0   : > { %9281 = vmatprep.subr.bf16.mxu1 %v7398_v61  ;;  %v7426_v61 = vld [vmem:[%s10030_s26 + $0x7b0] sm:$0xff]  }
  0xe2   : > { %9251 = vmatpush3.bf16.msra.mxu0 %v7374_v62 }
  0xe3   : > { %9283 = vmatpush3.bf16.msra.mxu1 %v7390_v63  ;;  %9253 = vmatprep.subr.bf16.mxu0 %v7383_v0  ;;  %v7419_v63 = vld [vmem:[%s10030_s26 + $0x778] sm:$0xff]  }
  0xe4   : > { %9285 = vmatprep.subr.bf16.mxu1 %v7399_v1  ;;  %v7435_v0 = vld [vmem:[%s10030_s26 + $0x7f8] sm:$0xff]   ;;  %v2431_v1 = vcombine.high %v223_v57, %v223_v57 }
  0xe6   : > { %9255 = vmatpush3.bf16.msra.mxu0 %v7375_v2  ;;  %v7411_v2 = vld [vmem:[%s10030_s26 + $0x738] sm:$0xff]  }
  0xe7   : > { %9287 = vmatpush3.bf16.msra.mxu1 %v7391_v3  ;;  %9257 = vmatprep.subr.bf16.mxu0 %v7384_v4  ;;  %v7427_v3 = vld [vmem:[%s10030_s26 + $0x7b8] sm:$0xff]   ;;  %v7444_v4 = vld [vmem:[%s10030_s26 + $0x840] sm:$0xff]  }
  0xe8   : > { %9289 = vmatprep.subr.bf16.mxu1 %v7400_v5  ;;  %v7460_v5 = vld [vmem:[%s10030_s26 + $0x8c0] sm:$0xff]  }
  0xea   : > { %9259 = vmatpush3.bf16.msra.mxu0 %v7376_v6  ;;  %v10389_v6 = vrot.slane %v223_v57, %v10045_v18  ;;  %v7477_v57 = vld [vmem:[%s10030_s26 + $0x948] sm:$0xff]  }
  0xeb   : > { %9291 = vmatpush3.bf16.msra.mxu1 %v7392_v7  ;;  %9261 = vmatprep.subr.bf16.mxu0 %v7385_v8  ;;  %v10392_v7 = vrot.slane %v2431_v1, %v10045_v18  ;;  %v7436_v8 = vld [vmem:[%s10030_s26 + $0x800] sm:$0xff]   ;;  %v7470_v1 = vld [vmem:[%s10030_s26 + $0x910] sm:$0xff]  }
  0xec   : > { %9293 = vmatprep.subr.bf16.mxu1 %v7401_v9  ;;  %v7452_v9 = vld [vmem:[%s10030_s26 + $0x880] sm:$0xff]  }
  0xee   : > { %9263 = vmatpush3.bf16.msra.mxu0 %v7377_v10  ;;  %v7445_v10 = vld [vmem:[%s10030_s26 + $0x848] sm:$0xff]  }
  0xef   : > { %9295 = vmatpush3.bf16.msra.mxu1 %v7393_v11  ;;  %9265 = vmatprep.subr.bf16.mxu0 %v7386_v12  ;;  %v7461_v11 = vld [vmem:[%s10030_s26 + $0x8c8] sm:$0xff]   ;;  %v2446_v12 = vcombine.high %v10389_v6, %v10389_v6 }
  0xf0   : > { %9297 = vmatprep.subr.bf16.mxu1 %v7402_v13  ;;  %v2447_v13 = vcombine.high %v10392_v7, %v10392_v7 }
  0xf2   : > { %9267 = vmatpush3.bf16.msra.mxu0 %v7378_v15  ;;  %v7453_v15 = vld [vmem:[%s10030_s26 + $0x888] sm:$0xff]  }
  0xf3   : > { %9299 = vmatpush3.bf16.msra.mxu1 %v7394_v16  ;;  %9269 = vmatprep.subr.bf16.mxu0 %v7387_v17  ;;  %v7446_v16 = vld [vmem:[%s10030_s26 + $0x850] sm:$0xff]  }
  0xf4   : > { %9301 = vmatprep.subr.bf16.mxu1 %v7403_v19  ;;  %v7462_v17 = vld [vmem:[%s10030_s26 + $0x8d0] sm:$0xff]  }
  0xf5   : > { %v7438_v19 = vld [vmem:[%s10030_s26 + $0x810] sm:$0xff]  }
  0xf6   : > { %9271 = vmatpush3.bf16.msra.mxu0 %v7379_v21  ;;  %v7447_v21 = vld [vmem:[%s10030_s26 + $0x858] sm:$0xff]  }
  0xf7   : > { %9303 = vmatpush3.bf16.msra.mxu1 %v7395_v22  ;;  %9305 = vmatprep.subr.bf16.mxu0 %v7412_v23  ;;  %v7463_v22 = vld [vmem:[%s10030_s26 + $0x8d8] sm:$0xff]  }
  0xf8   : > { %9337 = vmatprep.subr.bf16.mxu1 %v7428_v24  ;;  %v7439_v23 = vld [vmem:[%s10030_s26 + $0x818] sm:$0xff]  }
  0xf9   : > { %3536 = vmatmul.mubr.f32.vlgmr.msra.gmra.mrb[12].mxu0 %v10297_v50  ;;  %v7425_v50 = vld [vmem:[%s10030_s26 + $0x7a8] sm:$0xff]   ;;  %v7455_v24 = vld [vmem:[%s10030_s26 + $0x898] sm:$0xff]  }
  0xfa   : > { %3606 = vmatmul.mubr.f32.vlgmr.msra.gmra.mrb[12].mxu1 %v10300_v51  ;;  %9307 = vmatpush3.bf16.msra.mxu0 %v7404_v27  ;;  %v7440_v27 = vld [vmem:[%s10030_s26 + $0x820] sm:$0xff]  }
  0xfb   : > { %9339 = vmatpush3.bf16.msra.mxu1 %v7420_v28  ;;  %9309 = vmatprep.subr.bf16.mxu0 %v7413_v29  ;;  %v7456_v28 = vld [vmem:[%s10030_s26 + $0x8a0] sm:$0xff]   ;;  %v7449_v29 = vld [vmem:[%s10030_s26 + $0x868] sm:$0xff]  }
  0xfc   : > { %9341 = vmatprep.subr.bf16.mxu1 %v7429_v30  ;;  %3675 = vmatprep.mubr.f32.mxu0 %v2429_v31  ;;  %v7465_v30 = vld [vmem:[%s10030_s26 + $0x8e8] sm:$0xff]  }
  0xfd   : > { %3745 = vmatprep.mubr.f32.mxu1 %v2430_v32  ;;  %v7441_v31 = vld [vmem:[%s10030_s26 + $0x828] sm:$0xff]  }
  0xfe   : > { %9311 = vmatpush3.bf16.msra.mxu0 %v7405_v33  ;;  %v7457_v32 = vld [vmem:[%s10030_s26 + $0x8a8] sm:$0xff]  }
  0xff   : > { %9343 = vmatpush3.bf16.msra.mxu1 %v7421_v34  ;;  %9313 = vmatprep.subr.bf16.mxu0 %v7414_v35  ;;  %v7450_v35 = vld [vmem:[%s10030_s26 + $0x870] sm:$0xff]  }
 0x100   : > { %9345 = vmatprep.subr.bf16.mxu1 %v7430_v36  ;;  %v7466_v36 = vld [vmem:[%s10030_s26 + $0x8f0] sm:$0xff]  }
 0x102   : > { %9315 = vmatpush3.bf16.msra.mxu0 %v7406_v37 }
 0x103   : > { %9347 = vmatpush3.bf16.msra.mxu1 %v7422_v38  ;;  %9317 = vmatprep.subr.bf16.mxu0 %v7415_v39  ;;  %v224_v39 = vld [vmem:[%s10025_s22 + $0x48] sm:$0xff] }
 0x104   : > { %9349 = vmatprep.subr.bf16.mxu1 %v7431_v40 }
 0x106   : > { %9319 = vmatpush3.bf16.msra.mxu0 %v7407_v41 }
 0x107   : > { %9351 = vmatpush3.bf16.msra.mxu1 %v7423_v42  ;;  %9321 = vmatprep.subr.bf16.mxu0 %v7416_v43  ;;  %v7442_v42 = vld [vmem:[%s10030_s26 + $0x830] sm:$0xff]  }
 0x108   : > { %9353 = vmatprep.subr.bf16.mxu1 %v7432_v44  ;;  %v7458_v43 = vld [vmem:[%s10030_s26 + $0x8b0] sm:$0xff]  }
 0x10a   : > { %9323 = vmatpush3.bf16.msra.mxu0 %v7408_v45  ;;  %v7451_v45 = vld [vmem:[%s10030_s26 + $0x878] sm:$0xff]  }
 0x10b   : > { %9355 = vmatpush3.bf16.msra.mxu1 %v7424_v46  ;;  %9325 = vmatprep.subr.bf16.mxu0 %v7417_v47  ;;  %v7467_v46 = vld [vmem:[%s10030_s26 + $0x8f8] sm:$0xff]   ;;  %v2448_v47 = vcombine.high %v224_v39, %v224_v39 }
 0x10c   : > { %9357 = vmatprep.subr.bf16.mxu1 %v7433_v48  ;;  %v7724_v51 = vpop.f32.mrb[0].mxu0 }
 0x10d   : > { %v7759_v52 = vpop.f32.mrb[0].mxu1  ;;  %v7725_v55 = vpop.f32.mrb[1].mxu0 }
 0x10e   : > { %v7760_v56 = vpop.f32.mrb[1].mxu1  ;;  %v7726_v58 = vadd.f32 %v7725_v55, %v7724_v51  ;;  %9327 = vmatpush3.bf16.msra.mxu0 %v7409_v49  ;;  %v7443_v49 = vld [vmem:[%s10030_s26 + $0x838] sm:$0xff]   ;;  %v7476_v51 = vld [vmem:[%s10030_s26 + $0x940] sm:$0xff]  }
 0x10f   : > { %v7761_v59 = vadd.f32 %v7760_v56, %v7759_v52  ;;  %9359 = vmatpush3.bf16.msra.mxu1 %v7425_v50  ;;  %9329 = vmatprep.subr.bf16.mxu0 %v7418_v53  ;;  %v7459_v50 = vld [vmem:[%s10030_s26 + $0x8b8] sm:$0xff]   ;;  %v7492_v52 = vld [vmem:[%s10030_s26 + $0x9c0] sm:$0xff]   ;;  %v10437_v53 = vrot.slane %v224_v39, %v10045_v18 }
 0x110   : > { %9361 = vmatprep.subr.bf16.mxu1 %v7434_v54  ;;  %v10440_v54 = vrot.slane %v2448_v47, %v10045_v18  ;;  %v7468_v55 = vld [vmem:[%s10030_s26 + $0x900] sm:$0xff]   ;;  %v7526_v47 = vld [vmem:[%s10030_s26 + $0xad0] sm:$0xff]  }
 0x111   : > { %v10380_v62 = vadd.f32 %v7761_v59, %v7726_v58  ;;  %v7484_v56 = vld [vmem:[%s10030_s26 + $0x980] sm:$0xff]   ;;  %v7493_v58 = vld [vmem:[%s10030_s26 + $0x9c8] sm:$0xff]   ;;  %v2463_v59 = vcombine.high %v10437_v53, %v10437_v53 }
 0x112   : > { %9331 = vmatpush3.bf16.msra.mxu0 %v7410_v60  ;;  %v2464_v60 = vcombine.high %v10440_v54, %v10440_v54  ;;  %v7516_v39 = vld [vmem:[%s10030_s26 + $0xa80] sm:$0xff]  }
 0x113   : > { %9363 = vmatpush3.bf16.msra.mxu1 %v7426_v61  ;;  %9333 = vmatprep.subr.bf16.mxu0 %v7419_v63  ;;  %v7469_v61 = vld [vmem:[%s10030_s26 + $0x908] sm:$0xff]   ;;  %v7478_v63 = vld [vmem:[%s10030_s26 + $0x950] sm:$0xff]  }
 0x114   : > { %9365 = vmatprep.subr.bf16.mxu1 %v7435_v0  ;;  %v7494_v0 = vld [vmem:[%s10030_s26 + $0x9d0] sm:$0xff]  }
 0x116   : > { %9335 = vmatpush3.bf16.msra.mxu0 %v7411_v2  ;;  %v7486_v2 = vld [vmem:[%s10030_s26 + $0x990] sm:$0xff]  }
 0x117   : > { %9367 = vmatpush3.bf16.msra.mxu1 %v7427_v3  ;;  %9369 = vmatprep.subr.bf16.mxu0 %v7444_v4  ;;  %v7479_v3 = vld [vmem:[%s10030_s26 + $0x958] sm:$0xff]  }
 0x118   : > { %9401 = vmatprep.subr.bf16.mxu1 %v7460_v5  ;;  %v7495_v4 = vld [vmem:[%s10030_s26 + $0x9d8] sm:$0xff]  }
 0x119   : > { %3676 = vmatmul.mubr.f32.vlgmr.msra.gmra.mrb[14].mxu0 %v10342_v25  ;;  %v7448_v25 = vld [vmem:[%s10030_s26 + $0x860] sm:$0xff]   ;;  %v7471_v5 = vld [vmem:[%s10030_s26 + $0x918] sm:$0xff]  }
 0x11a   : > { %3746 = vmatmul.mubr.f32.vlgmr.msra.gmra.mrb[14].mxu1 %v10345_v26  ;;  %9371 = vmatpush3.bf16.msra.mxu0 %v7436_v8  ;;  %v7464_v26 = vld [vmem:[%s10030_s26 + $0x8e0] sm:$0xff]  }
 0x11b   : > { %9403 = vmatpush3.bf16.msra.mxu1 %v7452_v9  ;;  %9373 = vmatprep.subr.bf16.mxu0 %v7445_v10  ;;  %v7496_v8 = vld [vmem:[%s10030_s26 + $0x9e0] sm:$0xff]  }
 0x11c   : > { %9405 = vmatprep.subr.bf16.mxu1 %v7461_v11  ;;  %3815 = vmatprep.mubr.f32.mxu0 %v2446_v12  ;;  %v7472_v9 = vld [vmem:[%s10030_s26 + $0x920] sm:$0xff]   ;;  %v7481_v11 = vld [vmem:[%s10030_s26 + $0x968] sm:$0xff]  }
 0x11d   : > { %3885 = vmatprep.mubr.f32.mxu1 %v2447_v13  ;;  %v7488_v10 = vld [vmem:[%s10030_s26 + $0x9a0] sm:$0xff]   ;;  %v7497_v12 = vld [vmem:[%s10030_s26 + $0x9e8] sm:$0xff]  }
 0x11e   : > { %9375 = vmatpush3.bf16.msra.mxu0 %v7437_v14  ;;  %v7473_v13 = vld [vmem:[%s10030_s26 + $0x928] sm:$0xff]  }
 0x11f   : > { %9407 = vmatpush3.bf16.msra.mxu1 %v7453_v15  ;;  %9377 = vmatprep.subr.bf16.mxu0 %v7446_v16  ;;  %v7489_v14 = vld [vmem:[%s10030_s26 + $0x9a8] sm:$0xff]  }
 0x120   : > { %9409 = vmatprep.subr.bf16.mxu1 %v7462_v17  ;;  %v7482_v17 = vld [vmem:[%s10030_s26 + $0x970] sm:$0xff]  }
 0x122   : > { %9379 = vmatpush3.bf16.msra.mxu0 %v7438_v19  ;;  %v7498_v19 = vld [vmem:[%s10030_s26 + $0x9f0] sm:$0xff]  }
 0x123   : > { %9411 = vmatpush3.bf16.msra.mxu1 %v7454_v20  ;;  %9381 = vmatprep.subr.bf16.mxu0 %v7447_v21 }
 0x124   : > { %9413 = vmatprep.subr.bf16.mxu1 %v7463_v22  ;;  %v225_v22 = vld [vmem:[%s10025_s22 + $0x50] sm:$0xff] }
 0x126   : > { %9383 = vmatpush3.bf16.msra.mxu0 %v7439_v23 }
 0x127   : > { %9415 = vmatpush3.bf16.msra.mxu1 %v7455_v24  ;;  %9385 = vmatprep.subr.bf16.mxu0 %v7448_v25  ;;  %v7474_v25 = vld [vmem:[%s10030_s26 + $0x930] sm:$0xff]  }
 0x128   : > { %9417 = vmatprep.subr.bf16.mxu1 %v7464_v26  ;;  %v7490_v26 = vld [vmem:[%s10030_s26 + $0x9b0] sm:$0xff]  }
 0x12a   : > { %9387 = vmatpush3.bf16.msra.mxu0 %v7440_v27 }
 0x12b   : > { %9419 = vmatpush3.bf16.msra.mxu1 %v7456_v28  ;;  %9389 = vmatprep.subr.bf16.mxu0 %v7449_v29  ;;  %v7483_v28 = vld [vmem:[%s10030_s26 + $0x978] sm:$0xff]  }
 0x12c   : > { %9421 = vmatprep.subr.bf16.mxu1 %v7465_v30  ;;  %v7794_v33 = vpop.f32.mrb[2].mxu0  ;;  %v7499_v29 = vld [vmem:[%s10030_s26 + $0x9f8] sm:$0xff]   ;;  %v2465_v30 = vcombine.high %v225_v22, %v225_v22 }
 0x12d   : > { %v7829_v34 = vpop.f32.mrb[2].mxu1  ;;  %v7795_v37 = vpop.f32.mrb[3].mxu0 }
 0x12e   : > { %v7830_v38 = vpop.f32.mrb[3].mxu1  ;;  %v7796_v40 = vadd.f32 %v7795_v37, %v7794_v33  ;;  %9391 = vmatpush3.bf16.msra.mxu0 %v7441_v31  ;;  %v7491_v33 = vld [vmem:[%s10030_s26 + $0x9b8] sm:$0xff]   ;;  %v10488_v37 = vrot.slane %v2465_v30, %v10045_v18  ;;  %v7558_v30 = vld [vmem:[%s10030_s26 + $0xbd0] sm:$0xff]  }
 0x12f   : > { %v7831_v41 = vadd.f32 %v7830_v38, %v7829_v34  ;;  %9423 = vmatpush3.bf16.msra.mxu1 %v7457_v32  ;;  %9393 = vmatprep.subr.bf16.mxu0 %v7450_v35  ;;  %v7475_v32 = vld [vmem:[%s10030_s26 + $0x938] sm:$0xff]   ;;  %v7508_v34 = vld [vmem:[%s10030_s26 + $0xa40] sm:$0xff]  }
 0x130   : > { %9425 = vmatprep.subr.bf16.mxu1 %v7466_v36  ;;  %v2838_v44 = vadd.f32 %v7796_v40, %v10380_v62  ;;  %v7485_v62 = vld [vmem:[%s10030_s26 + $0x988] sm:$0xff]   ;;  %v7524_v35 = vld [vmem:[%s10030_s26 + $0xac0] sm:$0xff]   ;;  %v10485_v36 = vrot.slane %v225_v22, %v10045_v18 }
 0x131   : > { %v7500_v38 = vld [vmem:[%s10030_s26 + $0xa00] sm:$0xff]   ;;  %v7509_v40 = vld [vmem:[%s10030_s26 + $0xa48] sm:$0xff]  }
 0x132   : > { %v10430_v48 = vadd.f32 %v7831_v41, %v2838_v44  ;;  %9395 = vmatpush3.bf16.msra.mxu0 %v7442_v42  ;;  %v7525_v41 = vld [vmem:[%s10030_s26 + $0xac8] sm:$0xff]   ;;  %v2480_v42 = vcombine.high %v10485_v36, %v10485_v36  ;;  %v7548_v22 = vld [vmem:[%s10030_s26 + $0xb80] sm:$0xff]  }
 0x133   : > { %9427 = vmatpush3.bf16.msra.mxu1 %v7458_v43  ;;  %9397 = vmatprep.subr.bf16.mxu0 %v7451_v45  ;;  %v2481_v43 = vcombine.high %v10488_v37, %v10488_v37  ;;  %v7501_v44 = vld [vmem:[%s10030_s26 + $0xa08] sm:$0xff]  }
 0x134   : > { %9429 = vmatprep.subr.bf16.mxu1 %v7467_v46  ;;  %v7517_v45 = vld [vmem:[%s10030_s26 + $0xa88] sm:$0xff]   ;;  %v7510_v46 = vld [vmem:[%s10030_s26 + $0xa50] sm:$0xff]  }
 0x136   : > { %9399 = vmatpush3.bf16.msra.mxu0 %v7443_v49  ;;  %v7518_v49 = vld [vmem:[%s10030_s26 + $0xa90] sm:$0xff]  }
 0x137   : > { %9431 = vmatpush3.bf16.msra.mxu1 %v7459_v50  ;;  %9433 = vmatprep.subr.bf16.mxu0 %v7476_v51  ;;  %v7511_v50 = vld [vmem:[%s10030_s26 + $0xa58] sm:$0xff]  }
 0x138   : > { %9465 = vmatprep.subr.bf16.mxu1 %v7492_v52  ;;  %v7527_v51 = vld [vmem:[%s10030_s26 + $0xad8] sm:$0xff]  }
 0x139   : > { %3816 = vmatmul.mubr.f32.vlgmr.msra.gmra.mrb[16].mxu0 %v10389_v6  ;;  %v7487_v6 = vld [vmem:[%s10030_s26 + $0x998] sm:$0xff]  }
 0x13a   : > { %3886 = vmatmul.mubr.f32.vlgmr.msra.gmra.mrb[16].mxu1 %v10392_v7  ;;  %9435 = vmatpush3.bf16.msra.mxu0 %v7468_v55  ;;  %v7480_v7 = vld [vmem:[%s10030_s26 + $0x960] sm:$0xff]   ;;  %v7503_v52 = vld [vmem:[%s10030_s26 + $0xa18] sm:$0xff]  }
 0x13b   : > { %9467 = vmatpush3.bf16.msra.mxu1 %v7484_v56  ;;  %9437 = vmatprep.subr.bf16.mxu0 %v7477_v57  ;;  %v7528_v55 = vld [vmem:[%s10030_s26 + $0xae0] sm:$0xff]  }
 0x13c   : > { %9469 = vmatprep.subr.bf16.mxu1 %v7493_v58  ;;  %3955 = vmatprep.mubr.f32.mxu0 %v2463_v59  ;;  %v7504_v56 = vld [vmem:[%s10030_s26 + $0xa20] sm:$0xff]   ;;  %v7513_v58 = vld [vmem:[%s10030_s26 + $0xa68] sm:$0xff]  }
 0x13d   : > { %4025 = vmatprep.mubr.f32.mxu1 %v2464_v60  ;;  %v7520_v57 = vld [vmem:[%s10030_s26 + $0xaa0] sm:$0xff]   ;;  %v7529_v59 = vld [vmem:[%s10030_s26 + $0xae8] sm:$0xff]  }
 0x13e   : > { %9439 = vmatpush3.bf16.msra.mxu0 %v7469_v61  ;;  %v7505_v60 = vld [vmem:[%s10030_s26 + $0xa28] sm:$0xff]  }
 0x13f   : > { %9471 = vmatpush3.bf16.msra.mxu1 %v7485_v62  ;;  %9441 = vmatprep.subr.bf16.mxu0 %v7478_v63  ;;  %v7521_v61 = vld [vmem:[%s10030_s26 + $0xaa8] sm:$0xff]  }
 0x140   : > { %9473 = vmatprep.subr.bf16.mxu1 %v7494_v0  ;;  %v7514_v0 = vld [vmem:[%s10030_s26 + $0xa70] sm:$0xff]  }
 0x142   : > { %9443 = vmatpush3.bf16.msra.mxu0 %v7470_v1  ;;  %v7530_v1 = vld [vmem:[%s10030_s26 + $0xaf0] sm:$0xff]  }
 0x143   : > { %9475 = vmatpush3.bf16.msra.mxu1 %v7486_v2  ;;  %9445 = vmatprep.subr.bf16.mxu0 %v7479_v3 }
 0x144   : > { %9477 = vmatprep.subr.bf16.mxu1 %v7495_v4  ;;  %v226_v4 = vld [vmem:[%s10025_s22 + $0x58] sm:$0xff] }
 0x146   : > { %9447 = vmatpush3.bf16.msra.mxu0 %v7471_v5 }
 0x147   : > { %9479 = vmatpush3.bf16.msra.mxu1 %v7487_v6  ;;  %9449 = vmatprep.subr.bf16.mxu0 %v7480_v7  ;;  %v7506_v7 = vld [vmem:[%s10030_s26 + $0xa30] sm:$0xff]  }
 0x148   : > { %9481 = vmatprep.subr.bf16.mxu1 %v7496_v8  ;;  %v7522_v8 = vld [vmem:[%s10030_s26 + $0xab0] sm:$0xff]  }
 0x14a   : > { %9451 = vmatpush3.bf16.msra.mxu0 %v7472_v9 }
 0x14b   : > { %9483 = vmatpush3.bf16.msra.mxu1 %v7488_v10  ;;  %9453 = vmatprep.subr.bf16.mxu0 %v7481_v11  ;;  %v7515_v10 = vld [vmem:[%s10030_s26 + $0xa78] sm:$0xff]  }
 0x14c   : > { %9485 = vmatprep.subr.bf16.mxu1 %v7497_v12  ;;  %v7864_v15 = vpop.f32.mrb[4].mxu0  ;;  %v7531_v11 = vld [vmem:[%s10030_s26 + $0xaf8] sm:$0xff]   ;;  %v2482_v12 = vcombine.high %v226_v4, %v226_v4 }
 0x14d   : > { %v7899_v16 = vpop.f32.mrb[4].mxu1  ;;  %v7865_v20 = vpop.f32.mrb[5].mxu0 }
 0x14e   : > { %v7900_v21 = vpop.f32.mrb[5].mxu1  ;;  %v7866_v23 = vadd.f32 %v7865_v20, %v7864_v15  ;;  %9455 = vmatpush3.bf16.msra.mxu0 %v7473_v13  ;;  %v7523_v15 = vld [vmem:[%s10030_s26 + $0xab8] sm:$0xff]   ;;  %v10536_v20 = vrot.slane %v2482_v12, %v10045_v18  ;;  %v7590_v12 = vld [vmem:[%s10030_s26 + $0xcd0] sm:$0xff]  }
 0x14f   : > { %v7901_v24 = vadd.f32 %v7900_v21, %v7899_v16  ;;  %9487 = vmatpush3.bf16.msra.mxu1 %v7489_v14  ;;  %9457 = vmatprep.subr.bf16.mxu0 %v7482_v17  ;;  %v7507_v14 = vld [vmem:[%s10030_s26 + $0xa38] sm:$0xff]   ;;  %v7540_v16 = vld [vmem:[%s10030_s26 + $0xb40] sm:$0xff]  }
 0x150   : > { %9489 = vmatprep.subr.bf16.mxu1 %v7498_v19  ;;  %v2978_v27 = vadd.f32 %v7866_v23, %v10430_v48  ;;  %v7502_v48 = vld [vmem:[%s10030_s26 + $0xa10] sm:$0xff]   ;;  %v7556_v17 = vld [vmem:[%s10030_s26 + $0xbc0] sm:$0xff]   ;;  %v10533_v19 = vrot.slane %v226_v4, %v10045_v18  ;;  %v7541_v23 = vld [vmem:[%s10030_s26 + $0xb48] sm:$0xff]  }
 0x151   : > { %v7532_v21 = vld [vmem:[%s10030_s26 + $0xb00] sm:$0xff]  }
 0x152   : > { %v10478_v31 = vadd.f32 %v7901_v24, %v2978_v27  ;;  %9459 = vmatpush3.bf16.msra.mxu0 %v7474_v25  ;;  %v7557_v24 = vld [vmem:[%s10030_s26 + $0xbc8] sm:$0xff]   ;;  %v2497_v25 = vcombine.high %v10533_v19, %v10533_v19  ;;  %v7580_v4 = vld [vmem:[%s10030_s26 + $0xc80] sm:$0xff]  }
 0x153   : > { %9491 = vmatpush3.bf16.msra.mxu1 %v7490_v26  ;;  %9461 = vmatprep.subr.bf16.mxu0 %v7483_v28  ;;  %v2498_v26 = vcombine.high %v10536_v20, %v10536_v20  ;;  %v7533_v27 = vld [vmem:[%s10030_s26 + $0xb08] sm:$0xff]  }
 0x154   : > { %9493 = vmatprep.subr.bf16.mxu1 %v7499_v29  ;;  %v7549_v28 = vld [vmem:[%s10030_s26 + $0xb88] sm:$0xff]   ;;  %v7542_v29 = vld [vmem:[%s10030_s26 + $0xb50] sm:$0xff]  }
 0x156   : > { %9463 = vmatpush3.bf16.msra.mxu0 %v7475_v32  ;;  %v7550_v32 = vld [vmem:[%s10030_s26 + $0xb90] sm:$0xff]  }
 0x157   : > { %9495 = vmatpush3.bf16.msra.mxu1 %v7491_v33  ;;  %9497 = vmatprep.subr.bf16.mxu0 %v7508_v34  ;;  %v7543_v33 = vld [vmem:[%s10030_s26 + $0xb58] sm:$0xff]  }
 0x158   : > { %9529 = vmatprep.subr.bf16.mxu1 %v7524_v35  ;;  %v7559_v34 = vld [vmem:[%s10030_s26 + $0xbd8] sm:$0xff]  }
 0x159   : > { %3956 = vmatmul.mubr.f32.vlgmr.msra.gmra.mrb[18].mxu0 %v10437_v53  ;;  %v7519_v53 = vld [vmem:[%s10030_s26 + $0xa98] sm:$0xff]  }
 0x15a   : > { %4026 = vmatmul.mubr.f32.vlgmr.msra.gmra.mrb[18].mxu1 %v10440_v54  ;;  %9499 = vmatpush3.bf16.msra.mxu0 %v7500_v38  ;;  %v7512_v54 = vld [vmem:[%s10030_s26 + $0xa60] sm:$0xff]   ;;  %v7535_v35 = vld [vmem:[%s10030_s26 + $0xb18] sm:$0xff]  }
 0x15b   : > { %9531 = vmatpush3.bf16.msra.mxu1 %v7516_v39  ;;  %9501 = vmatprep.subr.bf16.mxu0 %v7509_v40  ;;  %v7560_v38 = vld [vmem:[%s10030_s26 + $0xbe0] sm:$0xff]  }
 0x15c   : > { %9533 = vmatprep.subr.bf16.mxu1 %v7525_v41  ;;  %4095 = vmatprep.mubr.f32.mxu0 %v2480_v42  ;;  %v7536_v39 = vld [vmem:[%s10030_s26 + $0xb20] sm:$0xff]   ;;  %v7545_v41 = vld [vmem:[%s10030_s26 + $0xb68] sm:$0xff]  }
 0x15d   : > { %4165 = vmatprep.mubr.f32.mxu1 %v2481_v43  ;;  %v7552_v40 = vld [vmem:[%s10030_s26 + $0xba0] sm:$0xff]   ;;  %v7561_v42 = vld [vmem:[%s10030_s26 + $0xbe8] sm:$0xff]  }
 0x15e   : > { %9503 = vmatpush3.bf16.msra.mxu0 %v7501_v44  ;;  %v7537_v43 = vld [vmem:[%s10030_s26 + $0xb28] sm:$0xff]  }
 0x15f   : > { %9535 = vmatpush3.bf16.msra.mxu1 %v7517_v45  ;;  %9505 = vmatprep.subr.bf16.mxu0 %v7510_v46  ;;  %v7553_v44 = vld [vmem:[%s10030_s26 + $0xba8] sm:$0xff]  }
 0x160   : > { %9537 = vmatprep.subr.bf16.mxu1 %v7526_v47  ;;  %v7546_v47 = vld [vmem:[%s10030_s26 + $0xb70] sm:$0xff]  }
 0x162   : > { %9507 = vmatpush3.bf16.msra.mxu0 %v7502_v48  ;;  %v7562_v48 = vld [vmem:[%s10030_s26 + $0xbf0] sm:$0xff]  }
 0x163   : > { %9539 = vmatpush3.bf16.msra.mxu1 %v7518_v49  ;;  %9509 = vmatprep.subr.bf16.mxu0 %v7511_v50 }
 0x164   : > { %9541 = vmatprep.subr.bf16.mxu1 %v7527_v51  ;;  %v227_v51 = vld [vmem:[%s10025_s22 + $0x60] sm:$0xff] }
 0x166   : > { %9511 = vmatpush3.bf16.msra.mxu0 %v7503_v52 }
 0x167   : > { %9543 = vmatpush3.bf16.msra.mxu1 %v7519_v53  ;;  %9513 = vmatprep.subr.bf16.mxu0 %v7512_v54  ;;  %v7538_v54 = vld [vmem:[%s10030_s26 + $0xb30] sm:$0xff]  }
 0x168   : > { %9545 = vmatprep.subr.bf16.mxu1 %v7528_v55  ;;  %v7554_v55 = vld [vmem:[%s10030_s26 + $0xbb0] sm:$0xff]  }
 0x16a   : > { %9515 = vmatpush3.bf16.msra.mxu0 %v7504_v56 }
 0x16b   : > { %9547 = vmatpush3.bf16.msra.mxu1 %v7520_v57  ;;  %9517 = vmatprep.subr.bf16.mxu0 %v7513_v58  ;;  %v7547_v57 = vld [vmem:[%s10030_s26 + $0xb78] sm:$0xff]  }
 0x16c   : > { %9549 = vmatprep.subr.bf16.mxu1 %v7529_v59  ;;  %v7934_v62 = vpop.f32.mrb[6].mxu0  ;;  %v7563_v58 = vld [vmem:[%s10030_s26 + $0xbf8] sm:$0xff]   ;;  %v2499_v59 = vcombine.high %v227_v51, %v227_v51 }
 0x16d   : > { %v7969_v63 = vpop.f32.mrb[6].mxu1  ;;  %v7935_v2 = vpop.f32.mrb[7].mxu0 }
 0x16e   : > { %v7970_v3 = vpop.f32.mrb[7].mxu1  ;;  %v7936_v5 = vadd.f32 %v7935_v2, %v7934_v62  ;;  %9519 = vmatpush3.bf16.msra.mxu0 %v7505_v60  ;;  %v7555_v62 = vld [vmem:[%s10030_s26 + $0xbb8] sm:$0xff]   ;;  %v10584_v2 = vrot.slane %v2499_v59, %v10045_v18  ;;  %v7622_v59 = vld [vmem:[%s10030_s26 + $0xdd0] sm:$0xff]  }
 0x16f   : > { %v7971_v6 = vadd.f32 %v7970_v3, %v7969_v63  ;;  %9551 = vmatpush3.bf16.msra.mxu1 %v7521_v61  ;;  %9521 = vmatprep.subr.bf16.mxu0 %v7514_v0  ;;  %v7539_v61 = vld [vmem:[%s10030_s26 + $0xb38] sm:$0xff]   ;;  %v7572_v63 = vld [vmem:[%s10030_s26 + $0xc40] sm:$0xff]  }
 0x170   : > { %9553 = vmatprep.subr.bf16.mxu1 %v7530_v1  ;;  %v3118_v9 = vadd.f32 %v7936_v5, %v10478_v31  ;;  %v7534_v31 = vld [vmem:[%s10030_s26 + $0xb10] sm:$0xff]   ;;  %v7588_v0 = vld [vmem:[%s10030_s26 + $0xcc0] sm:$0xff]   ;;  %v10581_v1 = vrot.slane %v227_v51, %v10045_v18  ;;  %v7573_v5 = vld [vmem:[%s10030_s26 + $0xc48] sm:$0xff]  }
 0x171   : > { %v7564_v3 = vld [vmem:[%s10030_s26 + $0xc00] sm:$0xff]  }
 0x172   : > { %v10526_v13 = vadd.f32 %v7971_v6, %v3118_v9  ;;  %9523 = vmatpush3.bf16.msra.mxu0 %v7506_v7  ;;  %v7589_v6 = vld [vmem:[%s10030_s26 + $0xcc8] sm:$0xff]   ;;  %v2514_v7 = vcombine.high %v10581_v1, %v10581_v1  ;;  %v7612_v51 = vld [vmem:[%s10030_s26 + $0xd80] sm:$0xff]  }
 0x173   : > { %9555 = vmatpush3.bf16.msra.mxu1 %v7522_v8  ;;  %9525 = vmatprep.subr.bf16.mxu0 %v7515_v10  ;;  %v2515_v8 = vcombine.high %v10584_v2, %v10584_v2  ;;  %v7565_v9 = vld [vmem:[%s10030_s26 + $0xc08] sm:$0xff]  }
 0x174   : > { %9557 = vmatprep.subr.bf16.mxu1 %v7531_v11  ;;  %v7581_v10 = vld [vmem:[%s10030_s26 + $0xc88] sm:$0xff]   ;;  %v7574_v11 = vld [vmem:[%s10030_s26 + $0xc50] sm:$0xff]  }
 0x176   : > { %9527 = vmatpush3.bf16.msra.mxu0 %v7507_v14  ;;  %v7582_v14 = vld [vmem:[%s10030_s26 + $0xc90] sm:$0xff]  }
 0x177   : > { %9559 = vmatpush3.bf16.msra.mxu1 %v7523_v15  ;;  %9561 = vmatprep.subr.bf16.mxu0 %v7540_v16  ;;  %v7575_v15 = vld [vmem:[%s10030_s26 + $0xc58] sm:$0xff]  }
 0x178   : > { %9593 = vmatprep.subr.bf16.mxu1 %v7556_v17  ;;  %v7591_v16 = vld [vmem:[%s10030_s26 + $0xcd8] sm:$0xff]  }
 0x179   : > { %4096 = vmatmul.mubr.f32.vlgmr.msra.gmra.mrb[20].mxu0 %v10485_v36  ;;  %v7551_v36 = vld [vmem:[%s10030_s26 + $0xb98] sm:$0xff]  }
 0x17a   : > { %4166 = vmatmul.mubr.f32.vlgmr.msra.gmra.mrb[20].mxu1 %v10488_v37  ;;  %9563 = vmatpush3.bf16.msra.mxu0 %v7532_v21  ;;  %v7544_v37 = vld [vmem:[%s10030_s26 + $0xb60] sm:$0xff]   ;;  %v7567_v17 = vld [vmem:[%s10030_s26 + $0xc18] sm:$0xff]  }
 0x17b   : > { %9595 = vmatpush3.bf16.msra.mxu1 %v7548_v22  ;;  %9565 = vmatprep.subr.bf16.mxu0 %v7541_v23  ;;  %v7592_v21 = vld [vmem:[%s10030_s26 + $0xce0] sm:$0xff]  }
 0x17c   : > { %9597 = vmatprep.subr.bf16.mxu1 %v7557_v24  ;;  %4235 = vmatprep.mubr.f32.mxu0 %v2497_v25  ;;  %v7568_v22 = vld [vmem:[%s10030_s26 + $0xc20] sm:$0xff]   ;;  %v7577_v24 = vld [vmem:[%s10030_s26 + $0xc68] sm:$0xff]  }
 0x17d   : > { %4305 = vmatprep.mubr.f32.mxu1 %v2498_v26  ;;  %v7584_v23 = vld [vmem:[%s10030_s26 + $0xca0] sm:$0xff]   ;;  %v7593_v25 = vld [vmem:[%s10030_s26 + $0xce8] sm:$0xff]  }
 0x17e   : > { %9567 = vmatpush3.bf16.msra.mxu0 %v7533_v27  ;;  %v7569_v26 = vld [vmem:[%s10030_s26 + $0xc28] sm:$0xff]  }
 0x17f   : > { %9599 = vmatpush3.bf16.msra.mxu1 %v7549_v28  ;;  %9569 = vmatprep.subr.bf16.mxu0 %v7542_v29  ;;  %v7585_v27 = vld [vmem:[%s10030_s26 + $0xca8] sm:$0xff]  }
 0x180   : > { %9601 = vmatprep.subr.bf16.mxu1 %v7558_v30  ;;  %v7578_v30 = vld [vmem:[%s10030_s26 + $0xc70] sm:$0xff]  }
 0x182   : > { %9571 = vmatpush3.bf16.msra.mxu0 %v7534_v31  ;;  %v7594_v31 = vld [vmem:[%s10030_s26 + $0xcf0] sm:$0xff]  }
 0x183   : > { %9603 = vmatpush3.bf16.msra.mxu1 %v7550_v32  ;;  %9573 = vmatprep.subr.bf16.mxu0 %v7543_v33 }
 0x184   : > { %9605 = vmatprep.subr.bf16.mxu1 %v7559_v34  ;;  %v228_v34 = vld [vmem:[%s10025_s22 + $0x68] sm:$0xff] }
 0x186   : > { %9575 = vmatpush3.bf16.msra.mxu0 %v7535_v35 }
 0x187   : > { %9607 = vmatpush3.bf16.msra.mxu1 %v7551_v36  ;;  %9577 = vmatprep.subr.bf16.mxu0 %v7544_v37  ;;  %v7570_v37 = vld [vmem:[%s10030_s26 + $0xc30] sm:$0xff]  }
 0x188   : > { %9609 = vmatprep.subr.bf16.mxu1 %v7560_v38  ;;  %v7586_v38 = vld [vmem:[%s10030_s26 + $0xcb0] sm:$0xff]  }
 0x18a   : > { %9579 = vmatpush3.bf16.msra.mxu0 %v7536_v39 }
 0x18b   : > { %9611 = vmatpush3.bf16.msra.mxu1 %v7552_v40  ;;  %9581 = vmatprep.subr.bf16.mxu0 %v7545_v41  ;;  %v7579_v40 = vld [vmem:[%s10030_s26 + $0xc78] sm:$0xff]  }
 0x18c   : > { %9613 = vmatprep.subr.bf16.mxu1 %v7561_v42  ;;  %v8004_v45 = vpop.f32.mrb[8].mxu0  ;;  %v7595_v41 = vld [vmem:[%s10030_s26 + $0xcf8] sm:$0xff]   ;;  %v2516_v42 = vcombine.high %v228_v34, %v228_v34 }
 0x18d   : > { %v8039_v46 = vpop.f32.mrb[8].mxu1  ;;  %v8005_v49 = vpop.f32.mrb[9].mxu0 }
 0x18e   : > { %v8040_v50 = vpop.f32.mrb[9].mxu1  ;;  %v8006_v52 = vadd.f32 %v8005_v49, %v8004_v45  ;;  %9583 = vmatpush3.bf16.msra.mxu0 %v7537_v43  ;;  %v7587_v45 = vld [vmem:[%s10030_s26 + $0xcb8] sm:$0xff]   ;;  %v10632_v49 = vrot.slane %v2516_v42, %v10045_v18  ;;  %v7654_v42 = vld [vmem:[%s10030_s26 + $0xed0] sm:$0xff]  }
 0x18f   : > { %v8041_v53 = vadd.f32 %v8040_v50, %v8039_v46  ;;  %9615 = vmatpush3.bf16.msra.mxu1 %v7553_v44  ;;  %9585 = vmatprep.subr.bf16.mxu0 %v7546_v47  ;;  %v7571_v44 = vld [vmem:[%s10030_s26 + $0xc38] sm:$0xff]   ;;  %v7604_v46 = vld [vmem:[%s10030_s26 + $0xd40] sm:$0xff]  }
 0x190   : > { %9617 = vmatprep.subr.bf16.mxu1 %v7562_v48  ;;  %v3258_v56 = vadd.f32 %v8006_v52, %v10526_v13  ;;  %v7566_v13 = vld [vmem:[%s10030_s26 + $0xc10] sm:$0xff]   ;;  %v7620_v47 = vld [vmem:[%s10030_s26 + $0xdc0] sm:$0xff]   ;;  %v10629_v48 = vrot.slane %v228_v34, %v10045_v18  ;;  %v7605_v52 = vld [vmem:[%s10030_s26 + $0xd48] sm:$0xff]  }
 0x191   : > { %v7596_v50 = vld [vmem:[%s10030_s26 + $0xd00] sm:$0xff]  }
 0x192   : > { %v10574_v60 = vadd.f32 %v8041_v53, %v3258_v56  ;;  %9587 = vmatpush3.bf16.msra.mxu0 %v7538_v54  ;;  %v7621_v53 = vld [vmem:[%s10030_s26 + $0xdc8] sm:$0xff]   ;;  %v2531_v54 = vcombine.high %v10629_v48, %v10629_v48  ;;  %v7644_v34 = vld [vmem:[%s10030_s26 + $0xe80] sm:$0xff]  }
 0x193   : > { %9619 = vmatpush3.bf16.msra.mxu1 %v7554_v55  ;;  %9589 = vmatprep.subr.bf16.mxu0 %v7547_v57  ;;  %v2532_v55 = vcombine.high %v10632_v49, %v10632_v49  ;;  %v7597_v56 = vld [vmem:[%s10030_s26 + $0xd08] sm:$0xff]  }
 0x194   : > { %9621 = vmatprep.subr.bf16.mxu1 %v7563_v58  ;;  %v7613_v57 = vld [vmem:[%s10030_s26 + $0xd88] sm:$0xff]   ;;  %v7606_v58 = vld [vmem:[%s10030_s26 + $0xd50] sm:$0xff]  }
 0x196   : > { %9591 = vmatpush3.bf16.msra.mxu0 %v7539_v61  ;;  %v7614_v61 = vld [vmem:[%s10030_s26 + $0xd90] sm:$0xff]  }
 0x197   : > { %9623 = vmatpush3.bf16.msra.mxu1 %v7555_v62  ;;  %9625 = vmatprep.subr.bf16.mxu0 %v7572_v63  ;;  %v7607_v62 = vld [vmem:[%s10030_s26 + $0xd58] sm:$0xff]  }
 0x198   : > { %9657 = vmatprep.subr.bf16.mxu1 %v7588_v0  ;;  %v7623_v63 = vld [vmem:[%s10030_s26 + $0xdd8] sm:$0xff]  }
 0x199   : > { %4236 = vmatmul.mubr.f32.vlgmr.msra.gmra.mrb[22].mxu0 %v10533_v19  ;;  %v7583_v19 = vld [vmem:[%s10030_s26 + $0xc98] sm:$0xff]  }
 0x19a   : > { %4306 = vmatmul.mubr.f32.vlgmr.msra.gmra.mrb[22].mxu1 %v10536_v20  ;;  %9627 = vmatpush3.bf16.msra.mxu0 %v7564_v3  ;;  %v7576_v20 = vld [vmem:[%s10030_s26 + $0xc60] sm:$0xff]   ;;  %v7599_v0 = vld [vmem:[%s10030_s26 + $0xd18] sm:$0xff]  }
 0x19b   : > { %9659 = vmatpush3.bf16.msra.mxu1 %v7580_v4  ;;  %9629 = vmatprep.subr.bf16.mxu0 %v7573_v5  ;;  %v7624_v3 = vld [vmem:[%s10030_s26 + $0xde0] sm:$0xff]  }
 0x19c   : > { %9661 = vmatprep.subr.bf16.mxu1 %v7589_v6  ;;  %4375 = vmatprep.mubr.f32.mxu0 %v2514_v7  ;;  %v7600_v4 = vld [vmem:[%s10030_s26 + $0xd20] sm:$0xff]   ;;  %v7609_v6 = vld [vmem:[%s10030_s26 + $0xd68] sm:$0xff]  }
 0x19d   : > { %4445 = vmatprep.mubr.f32.mxu1 %v2515_v8  ;;  %v7616_v5 = vld [vmem:[%s10030_s26 + $0xda0] sm:$0xff]   ;;  %v7625_v7 = vld [vmem:[%s10030_s26 + $0xde8] sm:$0xff]  }
 0x19e   : > { %9631 = vmatpush3.bf16.msra.mxu0 %v7565_v9  ;;  %v7601_v8 = vld [vmem:[%s10030_s26 + $0xd28] sm:$0xff]  }
 0x19f   : > { %9663 = vmatpush3.bf16.msra.mxu1 %v7581_v10  ;;  %9633 = vmatprep.subr.bf16.mxu0 %v7574_v11  ;;  %v7617_v9 = vld [vmem:[%s10030_s26 + $0xda8] sm:$0xff]  }
 0x1a0   : > { %9665 = vmatprep.subr.bf16.mxu1 %v7590_v12  ;;  %v7610_v12 = vld [vmem:[%s10030_s26 + $0xd70] sm:$0xff]  }
 0x1a2   : > { %9635 = vmatpush3.bf16.msra.mxu0 %v7566_v13  ;;  %v7626_v13 = vld [vmem:[%s10030_s26 + $0xdf0] sm:$0xff]  }
 0x1a3   : > { %9667 = vmatpush3.bf16.msra.mxu1 %v7582_v14  ;;  %9637 = vmatprep.subr.bf16.mxu0 %v7575_v15 }
 0x1a4   : > { %9669 = vmatprep.subr.bf16.mxu1 %v7591_v16  ;;  %v229_v16 = vld [vmem:[%s10025_s22 + $0x70] sm:$0xff] }
 0x1a6   : > { %9639 = vmatpush3.bf16.msra.mxu0 %v7567_v17 }
 0x1a7   : > { %9671 = vmatpush3.bf16.msra.mxu1 %v7583_v19  ;;  %9641 = vmatprep.subr.bf16.mxu0 %v7576_v20  ;;  %v7602_v20 = vld [vmem:[%s10030_s26 + $0xd30] sm:$0xff]  }
 0x1a8   : > { %9673 = vmatprep.subr.bf16.mxu1 %v7592_v21  ;;  %v7618_v21 = vld [vmem:[%s10030_s26 + $0xdb0] sm:$0xff]  }
 0x1aa   : > { %9643 = vmatpush3.bf16.msra.mxu0 %v7568_v22 }
 0x1ab   : > { %9675 = vmatpush3.bf16.msra.mxu1 %v7584_v23  ;;  %9645 = vmatprep.subr.bf16.mxu0 %v7577_v24  ;;  %v7611_v23 = vld [vmem:[%s10030_s26 + $0xd78] sm:$0xff]  }
 0x1ac   : > { %9677 = vmatprep.subr.bf16.mxu1 %v7593_v25  ;;  %v8074_v28 = vpop.f32.mrb[10].mxu0  ;;  %v7627_v24 = vld [vmem:[%s10030_s26 + $0xdf8] sm:$0xff]   ;;  %v2533_v25 = vcombine.high %v229_v16, %v229_v16 }
 0x1ad   : > { %v8109_v29 = vpop.f32.mrb[10].mxu1  ;;  %v8075_v32 = vpop.f32.mrb[11].mxu0 }
 0x1ae   : > { %v8110_v33 = vpop.f32.mrb[11].mxu1  ;;  %v8076_v35 = vadd.f32 %v8075_v32, %v8074_v28  ;;  %9647 = vmatpush3.bf16.msra.mxu0 %v7569_v26  ;;  %v7619_v28 = vld [vmem:[%s10030_s26 + $0xdb8] sm:$0xff]   ;;  %v10680_v32 = vrot.slane %v2533_v25, %v10045_v18  ;;  %v7662_v25 = vld [vmem:[%s10030_s26 + $0xf10] sm:$0xff]  }
 0x1af   : > { %v8111_v36 = vadd.f32 %v8110_v33, %v8109_v29  ;;  %9679 = vmatpush3.bf16.msra.mxu1 %v7585_v27  ;;  %9649 = vmatprep.subr.bf16.mxu0 %v7578_v30  ;;  %v7603_v27 = vld [vmem:[%s10030_s26 + $0xd38] sm:$0xff]   ;;  %v7636_v29 = vld [vmem:[%s10030_s26 + $0xe40] sm:$0xff]  }
 0x1b0   : > { %9681 = vmatprep.subr.bf16.mxu1 %v7594_v31  ;;  %v3398_v39 = vadd.f32 %v8076_v35, %v10574_v60  ;;  %v7598_v60 = vld [vmem:[%s10030_s26 + $0xd10] sm:$0xff]   ;;  %v7652_v30 = vld [vmem:[%s10030_s26 + $0xec0] sm:$0xff]   ;;  %v10677_v31 = vrot.slane %v229_v16, %v10045_v18  ;;  %v7637_v35 = vld [vmem:[%s10030_s26 + $0xe48] sm:$0xff]  }
 0x1b1   : > { %v7628_v33 = vld [vmem:[%s10030_s26 + $0xe00] sm:$0xff]  }
 0x1b2   : > { %v10622_v43 = vadd.f32 %v8111_v36, %v3398_v39  ;;  %9651 = vmatpush3.bf16.msra.mxu0 %v7570_v37  ;;  %v7653_v36 = vld [vmem:[%s10030_s26 + $0xec8] sm:$0xff]   ;;  %v2548_v37 = vcombine.high %v10677_v31, %v10677_v31  ;;  %v7676_v16 = vld [vmem:[%s10030_s26 + $0xf80] sm:$0xff]  }
 0x1b3   : > { %9683 = vmatpush3.bf16.msra.mxu1 %v7586_v38  ;;  %9653 = vmatprep.subr.bf16.mxu0 %v7579_v40  ;;  %v2549_v38 = vcombine.high %v10680_v32, %v10680_v32  ;;  %v7629_v39 = vld [vmem:[%s10030_s26 + $0xe08] sm:$0xff]  }
 0x1b4   : > { %9685 = vmatprep.subr.bf16.mxu1 %v7595_v41  ;;  %v7645_v40 = vld [vmem:[%s10030_s26 + $0xe88] sm:$0xff]   ;;  %v7638_v41 = vld [vmem:[%s10030_s26 + $0xe50] sm:$0xff]  }
 0x1b6   : > { %9655 = vmatpush3.bf16.msra.mxu0 %v7571_v44  ;;  %v7646_v44 = vld [vmem:[%s10030_s26 + $0xe90] sm:$0xff]  }
 0x1b7   : > { %9687 = vmatpush3.bf16.msra.mxu1 %v7587_v45  ;;  %9689 = vmatprep.subr.bf16.mxu0 %v7604_v46  ;;  %v7639_v45 = vld [vmem:[%s10030_s26 + $0xe58] sm:$0xff]  }
 0x1b8   : > { %9721 = vmatprep.subr.bf16.mxu1 %v7620_v47  ;;  %v7655_v46 = vld [vmem:[%s10030_s26 + $0xed8] sm:$0xff]  }
 0x1b9   : > { %4376 = vmatmul.mubr.f32.vlgmr.msra.gmra.mrb[24].mxu0 %v10581_v1  ;;  %v7615_v1 = vld [vmem:[%s10030_s26 + $0xd98] sm:$0xff]  }
 0x1ba   : > { %4446 = vmatmul.mubr.f32.vlgmr.msra.gmra.mrb[24].mxu1 %v10584_v2  ;;  %9691 = vmatpush3.bf16.msra.mxu0 %v7596_v50  ;;  %v7608_v2 = vld [vmem:[%s10030_s26 + $0xd60] sm:$0xff]   ;;  %v7631_v47 = vld [vmem:[%s10030_s26 + $0xe18] sm:$0xff]  }
 0x1bb   : > { %9723 = vmatpush3.bf16.msra.mxu1 %v7612_v51  ;;  %9693 = vmatprep.subr.bf16.mxu0 %v7605_v52  ;;  %v7656_v50 = vld [vmem:[%s10030_s26 + $0xee0] sm:$0xff]  }
 0x1bc   : > { %9725 = vmatprep.subr.bf16.mxu1 %v7621_v53  ;;  %4515 = vmatprep.mubr.f32.mxu0 %v2531_v54  ;;  %v7632_v51 = vld [vmem:[%s10030_s26 + $0xe20] sm:$0xff]   ;;  %v7641_v53 = vld [vmem:[%s10030_s26 + $0xe68] sm:$0xff]  }
 0x1bd   : > { %4585 = vmatprep.mubr.f32.mxu1 %v2532_v55  ;;  %v7648_v52 = vld [vmem:[%s10030_s26 + $0xea0] sm:$0xff]   ;;  %v7657_v54 = vld [vmem:[%s10030_s26 + $0xee8] sm:$0xff]  }
 0x1be   : > { %9695 = vmatpush3.bf16.msra.mxu0 %v7597_v56  ;;  %v7633_v55 = vld [vmem:[%s10030_s26 + $0xe28] sm:$0xff]  }
 0x1bf   : > { %9727 = vmatpush3.bf16.msra.mxu1 %v7613_v57  ;;  %9697 = vmatprep.subr.bf16.mxu0 %v7606_v58  ;;  %v7649_v56 = vld [vmem:[%s10030_s26 + $0xea8] sm:$0xff]  }
 0x1c0   : > { %9729 = vmatprep.subr.bf16.mxu1 %v7622_v59  ;;  %v7642_v59 = vld [vmem:[%s10030_s26 + $0xe70] sm:$0xff]  }
 0x1c2   : > { %9699 = vmatpush3.bf16.msra.mxu0 %v7598_v60  ;;  %v7658_v60 = vld [vmem:[%s10030_s26 + $0xef0] sm:$0xff]  }
 0x1c3   : > { %9731 = vmatpush3.bf16.msra.mxu1 %v7614_v61  ;;  %9701 = vmatprep.subr.bf16.mxu0 %v7607_v62 }
 0x1c4   : > { %9733 = vmatprep.subr.bf16.mxu1 %v7623_v63  ;;  %v230_v63 = vld [vmem:[%s10025_s22 + $0x78] sm:$0xff] }
 0x1c6   : > { %9703 = vmatpush3.bf16.msra.mxu0 %v7599_v0 }
 0x1c7   : > { %9735 = vmatpush3.bf16.msra.mxu1 %v7615_v1  ;;  %9705 = vmatprep.subr.bf16.mxu0 %v7608_v2  ;;  %v7634_v2 = vld [vmem:[%s10030_s26 + $0xe30] sm:$0xff]  }
 0x1c8   : > { %9737 = vmatprep.subr.bf16.mxu1 %v7624_v3  ;;  %v7650_v3 = vld [vmem:[%s10030_s26 + $0xeb0] sm:$0xff]  }
 0x1ca   : > { %9707 = vmatpush3.bf16.msra.mxu0 %v7600_v4 }
 0x1cb   : > { %9739 = vmatpush3.bf16.msra.mxu1 %v7616_v5  ;;  %9709 = vmatprep.subr.bf16.mxu0 %v7609_v6  ;;  %v7643_v5 = vld [vmem:[%s10030_s26 + $0xe78] sm:$0xff]  }
 0x1cc   : > { %9741 = vmatprep.subr.bf16.mxu1 %v7625_v7  ;;  %v8144_v10 = vpop.f32.mrb[12].mxu0  ;;  %v7659_v6 = vld [vmem:[%s10030_s26 + $0xef8] sm:$0xff]   ;;  %v2550_v7 = vcombine.high %v230_v63, %v230_v63 }
 0x1cd   : > { %v8179_v11 = vpop.f32.mrb[12].mxu1  ;;  %v8145_v14 = vpop.f32.mrb[13].mxu0 }
 0x1ce   : > { %v8180_v15 = vpop.f32.mrb[13].mxu1  ;;  %v8146_v17 = vadd.f32 %v8145_v14, %v8144_v10  ;;  %9711 = vmatpush3.bf16.msra.mxu0 %v7601_v8  ;;  %v7651_v10 = vld [vmem:[%s10030_s26 + $0xeb8] sm:$0xff]   ;;  %v10728_v14 = vrot.slane %v2550_v7, %v10045_v18 }
 0x1cf   : > { %v8181_v19 = vadd.f32 %v8180_v15, %v8179_v11  ;;  %9743 = vmatpush3.bf16.msra.mxu1 %v7617_v9  ;;  %9713 = vmatprep.subr.bf16.mxu0 %v7610_v12  ;;  %v7635_v9 = vld [vmem:[%s10030_s26 + $0xe38] sm:$0xff]   ;;  %v7668_v11 = vld [vmem:[%s10030_s26 + $0xf40] sm:$0xff]  }
 0x1d0   : > { %9745 = vmatprep.subr.bf16.mxu1 %v7626_v13  ;;  %v3538_v22 = vadd.f32 %v8146_v17, %v10622_v43  ;;  %v7630_v43 = vld [vmem:[%s10030_s26 + $0xe10] sm:$0xff]   ;;  %v7684_v12 = vld [vmem:[%s10030_s26 + $0xfc0] sm:$0xff]   ;;  %v10725_v13 = vrot.slane %v230_v63, %v10045_v18  ;;  %v7669_v17 = vld [vmem:[%s10030_s26 + $0xf48] sm:$0xff]  }
 0x1d1   : > { %v7660_v15 = vld [vmem:[%s10030_s26 + $0xf00] sm:$0xff]   ;;  %v7661_v18 = vld [vmem:[%s10030_s26 + $0xf08] sm:$0xff]  }
 0x1d2   : > { %v10670_v26 = vadd.f32 %v8181_v19, %v3538_v22  ;;  %9715 = vmatpush3.bf16.msra.mxu0 %v7602_v20  ;;  %v7685_v19 = vld [vmem:[%s10030_s26 + $0xfc8] sm:$0xff]   ;;  %v2565_v20 = vcombine.high %v10725_v13, %v10725_v13 }
 0x1d3   : > { %9747 = vmatpush3.bf16.msra.mxu1 %v7618_v21  ;;  %9717 = vmatprep.subr.bf16.mxu0 %v7611_v23  ;;  %v2566_v21 = vcombine.high %v10728_v14, %v10728_v14  ;;  %v7677_v22 = vld [vmem:[%s10030_s26 + $0xf88] sm:$0xff]   ;;  %v7670_v23 = vld [vmem:[%s10030_s26 + $0xf50] sm:$0xff]  }
 0x1d4   : > { %9749 = vmatprep.subr.bf16.mxu1 %v7627_v24  ;;  %v7686_v24 = vld [vmem:[%s10030_s26 + $0xfd0] sm:$0xff]  }
 0x1d6   : > { %9719 = vmatpush3.bf16.msra.mxu0 %v7603_v27  ;;  %v7671_v27 = vld [vmem:[%s10030_s26 + $0xf58] sm:$0xff]  }
 0x1d7   : > { %9751 = vmatpush3.bf16.msra.mxu1 %v7619_v28  ;;  %9753 = vmatprep.subr.bf16.mxu0 %v7636_v29  ;;  %v7687_v28 = vld [vmem:[%s10030_s26 + $0xfd8] sm:$0xff]  }
 0x1d8   : > { %9785 = vmatprep.subr.bf16.mxu1 %v7652_v30  ;;  %v7663_v29 = vld [vmem:[%s10030_s26 + $0xf18] sm:$0xff]  }
 0x1d9   : > { %4516 = vmatmul.mubr.f32.vlgmr.msra.gmra.mrb[26].mxu0 %v10629_v48  ;;  %v7647_v48 = vld [vmem:[%s10030_s26 + $0xe98] sm:$0xff]  }
 0x1da   : > { %4586 = vmatmul.mubr.f32.vlgmr.msra.gmra.mrb[26].mxu1 %v10632_v49  ;;  %9755 = vmatpush3.bf16.msra.mxu0 %v7628_v33  ;;  %v7640_v49 = vld [vmem:[%s10030_s26 + $0xe60] sm:$0xff]   ;;  %v7679_v30 = vld [vmem:[%s10030_s26 + $0xf98] sm:$0xff]  }
 0x1db   : > { %9787 = vmatpush3.bf16.msra.mxu1 %v7644_v34  ;;  %9757 = vmatprep.subr.bf16.mxu0 %v7637_v35  ;;  %v7664_v33 = vld [vmem:[%s10030_s26 + $0xf20] sm:$0xff]   ;;  %v7673_v35 = vld [vmem:[%s10030_s26 + $0xf68] sm:$0xff]  }
 0x1dc   : > { %9789 = vmatprep.subr.bf16.mxu1 %v7653_v36  ;;  %4655 = vmatprep.mubr.f32.mxu0 %v2548_v37  ;;  %v7680_v34 = vld [vmem:[%s10030_s26 + $0xfa0] sm:$0xff]   ;;  %v7689_v36 = vld [vmem:[%s10030_s26 + $0xfe8] sm:$0xff]  }
 0x1dd   : > { %4725 = vmatprep.mubr.f32.mxu1 %v2549_v38  ;;  %v7665_v37 = vld [vmem:[%s10030_s26 + $0xf28] sm:$0xff]  }
 0x1de   : > { %9759 = vmatpush3.bf16.msra.mxu0 %v7629_v39  ;;  %v7681_v38 = vld [vmem:[%s10030_s26 + $0xfa8] sm:$0xff]  }
 0x1df   : > { %9791 = vmatpush3.bf16.msra.mxu1 %v7645_v40  ;;  %9761 = vmatprep.subr.bf16.mxu0 %v7638_v41  ;;  %v7674_v41 = vld [vmem:[%s10030_s26 + $0xf70] sm:$0xff]  }
 0x1e0   : > { %9793 = vmatprep.subr.bf16.mxu1 %v7654_v42  ;;  %v7690_v42 = vld [vmem:[%s10030_s26 + $0xff0] sm:$0xff]  }
 0x1e2   : > { %9763 = vmatpush3.bf16.msra.mxu0 %v7630_v43 }
 0x1e3   : > { %9795 = vmatpush3.bf16.msra.mxu1 %v7646_v44  ;;  %9765 = vmatprep.subr.bf16.mxu0 %v7639_v45 }
 0x1e4   : > { %9797 = vmatprep.subr.bf16.mxu1 %v7655_v46 }
 0x1e6   : > { %9767 = vmatpush3.bf16.msra.mxu0 %v7631_v47  ;;  %v7666_v47 = vld [vmem:[%s10030_s26 + $0xf30] sm:$0xff]  }
 0x1e7   : > { %9799 = vmatpush3.bf16.msra.mxu1 %v7647_v48  ;;  %9769 = vmatprep.subr.bf16.mxu0 %v7640_v49  ;;  %v7682_v48 = vld [vmem:[%s10030_s26 + $0xfb0] sm:$0xff]  }
 0x1e8   : > { %9801 = vmatprep.subr.bf16.mxu1 %v7656_v50  ;;  %v7675_v50 = vld [vmem:[%s10030_s26 + $0xf78] sm:$0xff]  }
 0x1ea   : > { %9771 = vmatpush3.bf16.msra.mxu0 %v7632_v51  ;;  %v7691_v51 = vld [vmem:[%s10030_s26 + $0xff8] sm:$0xff]  }
 0x1eb   : > { %9803 = vmatpush3.bf16.msra.mxu1 %v7648_v52  ;;  %9773 = vmatprep.subr.bf16.mxu0 %v7641_v53  ;;  %v7667_v53 = vld [vmem:[%s10030_s26 + $0xf38] sm:$0xff]  }
 0x1ec   : > { %9805 = vmatprep.subr.bf16.mxu1 %v7657_v54  ;;  %v8214_v57 = vpop.f32.mrb[14].mxu0  ;;  %v7683_v54 = vld [vmem:[%s10030_s26 + $0xfb8] sm:$0xff]  }
 0x1ed   : > { %v8249_v58 = vpop.f32.mrb[14].mxu1  ;;  %v8215_v61 = vpop.f32.mrb[15].mxu0 }
 0x1ee   : > { %v8250_v62 = vpop.f32.mrb[15].mxu1  ;;  %v8216_v0 = vadd.f32 %v8215_v61, %v8214_v57  ;;  %9775 = vmatpush3.bf16.msra.mxu0 %v7633_v55 }
 0x1ef   : > { %v8251_v1 = vadd.f32 %v8250_v62, %v8249_v58  ;;  %9807 = vmatpush3.bf16.msra.mxu1 %v7649_v56  ;;  %9777 = vmatprep.subr.bf16.mxu0 %v7642_v59 }
 0x1f0   : > { %9809 = vmatprep.subr.bf16.mxu1 %v7658_v60  ;;  %v3678_v4 = vadd.f32 %v8216_v0, %v10670_v26  ;;  %v7678_v26 = vld [vmem:[%s10030_s26 + $0xf90] sm:$0xff]  }
 0x1f2   : > { %v10718_v8 = vadd.f32 %v8251_v1, %v3678_v4  ;;  %9779 = vmatpush3.bf16.msra.mxu0 %v7634_v2 }
 0x1f3   : > { %9811 = vmatpush3.bf16.msra.mxu1 %v7650_v3  ;;  %9781 = vmatprep.subr.bf16.mxu0 %v7643_v5 }
 0x1f4   : > { %9813 = vmatprep.subr.bf16.mxu1 %v7659_v6 }
 0x1f6   : > { %9783 = vmatpush3.bf16.msra.mxu0 %v7635_v9 }
 0x1f7   : > { %9815 = vmatpush3.bf16.msra.mxu1 %v7651_v10  ;;  %9817 = vmatprep.subr.bf16.mxu0 %v7668_v11 }
 0x1f8   : > { %9849 = vmatprep.subr.bf16.mxu1 %v7684_v12 }
 0x1f9   : > { %4656 = vmatmul.mubr.f32.vlgmr.msra.gmra.mrb[28].mxu0 %v10677_v31  ;;  %v7672_v31 = vld [vmem:[%s10030_s26 + $0xf60] sm:$0xff]  }
 0x1fa   : > { %4726 = vmatmul.mubr.f32.vlgmr.msra.gmra.mrb[28].mxu1 %v10680_v32  ;;  %9819 = vmatpush3.bf16.msra.mxu0 %v7660_v15  ;;  %v7688_v32 = vld [vmem:[%s10030_s26 + $0xfe0] sm:$0xff]  }
 0x1fb   : > { %9851 = vmatpush3.bf16.msra.mxu1 %v7676_v16  ;;  %9821 = vmatprep.subr.bf16.mxu0 %v7669_v17 }
 0x1fc   : > { %9853 = vmatprep.subr.bf16.mxu1 %v7685_v19  ;;  %4795 = vmatprep.mubr.f32.mxu0 %v2565_v20 }
 0x1fd   : > { %4865 = vmatprep.mubr.f32.mxu1 %v2566_v21 }
 0x1fe   : > { %9823 = vmatpush3.bf16.msra.mxu0 %v7661_v18 }
 0x1ff   : > { %9855 = vmatpush3.bf16.msra.mxu1 %v7677_v22  ;;  %9825 = vmatprep.subr.bf16.mxu0 %v7670_v23 }
 0x200   : > { %9857 = vmatprep.subr.bf16.mxu1 %v7686_v24 }
 0x202   : > { %9827 = vmatpush3.bf16.msra.mxu0 %v7662_v25 }
 0x203   : > { %9859 = vmatpush3.bf16.msra.mxu1 %v7678_v26  ;;  %9829 = vmatprep.subr.bf16.mxu0 %v7671_v27 }
 0x204   : > { %9861 = vmatprep.subr.bf16.mxu1 %v7687_v28 }
 0x206   : > { %9831 = vmatpush3.bf16.msra.mxu0 %v7663_v29 }
 0x207   : > { %9863 = vmatpush3.bf16.msra.mxu1 %v7679_v30  ;;  %9833 = vmatprep.subr.bf16.mxu0 %v7672_v31 }
 0x208   : > { %9865 = vmatprep.subr.bf16.mxu1 %v7688_v32 }
 0x20a   : > { %9835 = vmatpush3.bf16.msra.mxu0 %v7664_v33 }
 0x20b   : > { %9867 = vmatpush3.bf16.msra.mxu1 %v7680_v34  ;;  %9837 = vmatprep.subr.bf16.mxu0 %v7673_v35 }
 0x20c   : > { %9869 = vmatprep.subr.bf16.mxu1 %v7689_v36  ;;  %v8284_v39 = vpop.f32.mrb[16].mxu0 }
 0x20d   : > { %v8319_v40 = vpop.f32.mrb[16].mxu1  ;;  %v8285_v43 = vpop.f32.mrb[17].mxu0 }
 0x20e   : > { %v8320_v44 = vpop.f32.mrb[17].mxu1  ;;  %v8286_v45 = vadd.f32 %v8285_v43, %v8284_v39  ;;  %9839 = vmatpush3.bf16.msra.mxu0 %v7665_v37 }
 0x20f   : > { %v8321_v46 = vadd.f32 %v8320_v44, %v8319_v40  ;;  %9871 = vmatpush3.bf16.msra.mxu1 %v7681_v38  ;;  %9841 = vmatprep.subr.bf16.mxu0 %v7674_v41 }
 0x210   : > { %9873 = vmatprep.subr.bf16.mxu1 %v7690_v42  ;;  %v3818_v49 = vadd.f32 %v8286_v45, %v10718_v8 }
 0x212   : > { %v3888_v52 = vadd.f32 %v8321_v46, %v3818_v49  ;;  %9843 = vmatpush3.bf16.msra.mxu0 %v7666_v47  ;;  %v214_v46 = vld [vmem:[#allocation2] sm:$0x3]  ;;  %v4879_v49 = vld [vmem:[%s10837_s2] sm:$0xff] (!%p5125_p6) }
 0x213   : > { %9875 = vmatpush3.bf16.msra.mxu1 %v7682_v48  ;;  %9845 = vmatprep.subr.bf16.mxu0 %v7675_v50  ;;  %v4880_v50 = vld [vmem:[%s10837_s2 + $0x8] sm:$0xff] (!%p5125_p6) }
 0x214   : > { %9877 = vmatprep.subr.bf16.mxu1 %v7691_v51  ;;  %v4881_v51 = vld [vmem:[%s10837_s2 + $0x10] sm:$0xff] (!%p5125_p6) }
 0x216   : > { %9847 = vmatpush3.bf16.msra.mxu0 %v7667_v53  ;;  %v9881_v53 = vpack.c.bf16 (!%p5125_p6), %v4880_v50, %v4879_v49 }
 0x217   : > { %9879 = vmatpush3.bf16.msra.mxu1 %v7683_v54  ;;  %v4882_v54 = vld [vmem:[%s10837_s2 + $0x18] sm:$0xff] (!%p5125_p6) }
 0x219   : > { %4796 = vmatmul.mubr.f32.vlgmr.msra.gmra.mrb[30].mxu0 %v10725_v13 }
 0x21a   : > { %4866 = vmatmul.mubr.f32.vlgmr.msra.gmra.mrb[30].mxu1 %v10728_v14 }
 0x22c   : > { %v8354_v55 = vpop.f32.mrb[18].mxu0 }
 0x22d   : > { %v8389_v56 = vpop.f32.mrb[18].mxu1  ;;  %v8355_v57 = vpop.f32.mrb[19].mxu0 }
 0x22e   : > { %v8390_v58 = vpop.f32.mrb[19].mxu1  ;;  %v8356_v59 = vadd.f32 %v8355_v57, %v8354_v55  ;;  %v9982_v55 = vmov (!%p5125_p6), 0.0   ;;  %v4883_v57 = vld [vmem:[%s10837_s2 + $0x20] sm:$0xff] (!%p5125_p6) }
 0x22f   : > { %v8391_v60 = vadd.f32 %v8390_v58, %v8389_v56  ;;  %8846 = vmatprep.mubr.msk.f32.mxu0 (!%p5125_p6), %vm9981_vm2, %v9982_v55  ;;  %8853 = vmatprep.mubr.msk.f32.mxu1 (!%p5125_p6), %vm9981_vm2, %v9982_v55  ;;  %v9884_v56 = vpack.c.bf16 (!%p5125_p6), %v4882_v54, %v4881_v51  ;;  %v4884_v58 = vld [vmem:[%s10837_s2 + $0x28] sm:$0xff] (!%p5125_p6) }
 0x230   : > { %v3958_v61 = vadd.f32 %v8356_v59, %v3888_v52  ;;  %v9980_v52 = vmov (!%p5125_p6), 0.0|0.0   ;;  %v9887_v59 = vpack.c.bf16 (!%p5125_p6), %v4884_v58, %v4883_v57 }
 0x231   : > { %9880 = vmatprep.subr.bf16.mxu0 (!%p5125_p6), %v9980_v52  ;;  %9895 = vmatprep.subr.bf16.mxu1 (!%p5125_p6), %v9980_v52 }
 0x232   : > { %v4028_v62 = vadd.f32 %v8391_v60, %v3958_v61  ;;  %9882 = vmatpush3.bf16.msra.mxu0 (!%p5125_p6), %v9881_v53  ;;  %v4885_v60 = vld [vmem:[%s10837_s2 + $0x30] sm:$0xff] (!%p5125_p6)  ;;  %v4886_v61 = vld [vmem:[%s10837_s2 + $0x38] sm:$0xff] (!%p5125_p6) }
 0x233   : > { %9883 = vmatprep.subr.bf16.mxu0 (!%p5125_p6), %v9980_v52 }
 0x236   : > { %9885 = vmatpush3.bf16.msra.mxu0 (!%p5125_p6), %v9884_v56 }
 0x237   : > { %9886 = vmatprep.subr.bf16.mxu0 (!%p5125_p6), %v9980_v52 }
 0x23a   : > { %9888 = vmatpush3.bf16.msra.mxu0 (!%p5125_p6), %v9887_v59 }
 0x23b   : > { %9889 = vmatprep.subr.bf16.mxu0 (!%p5125_p6), %v9980_v52 }
 0x24c   : > { %v8424_v63 = vpop.f32.mrb[20].mxu0 }
 0x24d   : > { %v8459_v0 = vpop.f32.mrb[20].mxu1  ;;  %v8425_v1 = vpop.f32.mrb[21].mxu0 }
 0x24e   : > { %v8460_v2 = vpop.f32.mrb[21].mxu1  ;;  %v8426_v3 = vadd.f32 %v8425_v1, %v8424_v63  ;;  %v4887_v63 = vld [vmem:[%s10837_s2 + $0x40] sm:$0xff] (!%p5125_p6) }
 0x24f   : > { %v8461_v4 = vadd.f32 %v8460_v2, %v8459_v0  ;;  %v4888_v0 = vld [vmem:[%s10837_s2 + $0x48] sm:$0xff] (!%p5125_p6) }
 0x250   : > { %v4098_v5 = vadd.f32 %v8426_v3, %v4028_v62  ;;  %v9890_v62 = vpack.c.bf16 (!%p5125_p6), %v4886_v61, %v4885_v60  ;;  %v9893_v1 = vpack.c.bf16 (!%p5125_p6), %v4888_v0, %v4887_v63  ;;  %v4964_v3 = vld [vmem:[%s10838_s3] sm:$0xff] (!%p5125_p6) }
 0x252   : > { %v4168_v6 = vadd.f32 %v8461_v4, %v4098_v5  ;;  %9891 = vmatpush3.bf16.msra.mxu0 (!%p5125_p6), %v9890_v62  ;;  %v4965_v4 = vld [vmem:[%s10838_s3 + $0x8] sm:$0x7f] (!%p5125_p6) }
 0x253   : > { %9892 = vmatprep.subr.bf16.mxu0 (!%p5125_p6), %v9980_v52  ;;  %v9896_v5 = vpack.c.bf16 (!%p5125_p6), %v4965_v4, %v4964_v3 }
 0x255   : > { %9898 = vmatpush3.bf16.msk.msra.mxu1 (!%p5125_p6), %vm9897_vm6, %v9896_v5 }
 0x256   : > { %9894 = vmatpush3.bf16.msra.mxu0 (!%p5125_p6), %v9893_v1 }
 0x26c   : > { %v8494_v7 = vpop.f32.mrb[22].mxu0 }
 0x26d   : > { %v8529_v8 = vpop.f32.mrb[22].mxu1  ;;  %v8495_v9 = vpop.f32.mrb[23].mxu0 }
 0x26e   : > { %v8530_v10 = vpop.f32.mrb[23].mxu1  ;;  %v8496_v11 = vadd.f32 %v8495_v9, %v8494_v7 }
 0x26f   : > { %v8531_v12 = vadd.f32 %v8530_v10, %v8529_v8 }
 0x270   : > { %v4238_v13 = vadd.f32 %v8496_v11, %v4168_v6 }
 0x272   : > { %v4308_v14 = vadd.f32 %v8531_v12, %v4238_v13 }
 0x28c   : > { %v8564_v15 = vpop.f32.mrb[24].mxu0 }
 0x28d   : > { %v8599_v16 = vpop.f32.mrb[24].mxu1  ;;  %v8565_v17 = vpop.f32.mrb[25].mxu0 }
 0x28e   : > { %v8600_v19 = vpop.f32.mrb[25].mxu1  ;;  %v8566_v20 = vadd.f32 %v8565_v17, %v8564_v15 }
 0x28f   : > { %v8601_v21 = vadd.f32 %v8600_v19, %v8599_v16 }
 0x290   : > { %v4378_v18 = vadd.f32 %v8566_v20, %v4308_v14 }
 0x292   : > { %v4448_v22 = vadd.f32 %v8601_v21, %v4378_v18 }
 0x2ac   : > { %v8634_v23 = vpop.f32.mrb[26].mxu0 }
 0x2ad   : > { %v8669_v24 = vpop.f32.mrb[26].mxu1  ;;  %v8635_v25 = vpop.f32.mrb[27].mxu0 }
 0x2ae   : > { %v8670_v26 = vpop.f32.mrb[27].mxu1  ;;  %v8636_v27 = vadd.f32 %v8635_v25, %v8634_v23 }
 0x2af   : > { %v8671_v28 = vadd.f32 %v8670_v26, %v8669_v24 }
 0x2b0   : > { %v4518_v29 = vadd.f32 %v8636_v27, %v4448_v22 }
 0x2b2   : > { %v4588_v30 = vadd.f32 %v8671_v28, %v4518_v29 }
 0x2cc   : > { %v8704_v31 = vpop.f32.mrb[28].mxu0 }
 0x2cd   : > { %v8739_v32 = vpop.f32.mrb[28].mxu1  ;;  %v8705_v33 = vpop.f32.mrb[29].mxu0 }
 0x2ce   : > { %v8740_v34 = vpop.f32.mrb[29].mxu1  ;;  %v8706_v35 = vadd.f32 %v8705_v33, %v8704_v31 }
 0x2cf   : > { %v8741_v36 = vadd.f32 %v8740_v34, %v8739_v32 }
 0x2d0   : > { %v4658_v37 = vadd.f32 %v8706_v35, %v4588_v30 }
 0x2d2   : > { %v4728_v38 = vadd.f32 %v8741_v36, %v4658_v37 }
 0x2ec   : > { %v8774_v39 = vpop.f32.mrb[30].mxu0 }
 0x2ed   : > { %v8809_v40 = vpop.f32.mrb[30].mxu1  ;;  %v8775_v41 = vpop.f32.mrb[31].mxu0 }
 0x2ee   : > { %v8810_v42 = vpop.f32.mrb[31].mxu1  ;;  %v8776_v43 = vadd.f32 %v8775_v41, %v8774_v39 }
 0x2ef   : > { %v8811_v44 = vadd.f32 %v8810_v42, %v8809_v40 }
 0x2f0   : > { %v4798_v45 = vadd.f32 %v8776_v43, %v4728_v38  ;;  %4877 = sbr.rel (%p5125_p6) target bundleno = 1509 (0x5e5), region = 44 }
 0x2f2   : > { %v4868_v47 = vadd.f32 %v8811_v44, %v4798_v45 }
 0x2f4   : > { %v4871_v48 = vadd.f32 %v4868_v47, %v214_v46 }
 0x2f6   : > { %4873 = vst.msk [vmem:[#allocation2] sm:$0x3] %vm4872_vm1, %v4871_v48 }
 0x2fd   : > { %v4878_v2 = vld [vmem:[#allocation2] sm:$0x3] }
 0x2fe   : > { %8847 = vmatmul.mubr.msk.f32.vlgmr.msra.gmra.mrb[0].mxu0 %vm4889_vm3, %v4878_v2 }
 0x3d1   : > { %v4959_v6 = vpop.f32.mrb[0].mxu0 }
 0x3d2   : > { %v4963_v7 = vmax.f32 %v4959_v6, 0.0  ;;  %v8848_v8 = vpop.f32.mrb[1].mxu0 }
 0x3d4   : > { %8854 = vmatmul.mubr.msk.f32.vlgmr.msra.gmra.mrb[0].mxu1 %vm4966_vm7, %v4963_v7 }
 0x4a7   : > { %v5040_v9 = vpop.f32.mrb[0].mxu1 }
 0x4a8   : > { %v8855_v10 = vpop.f32.mrb[1].mxu1  ;;  %v5045_v11 = vsel %vm5044_vm8, %v5040_v9, -inf }
 0x4a9   : > { %5046 = vmax.xlane.f32.xlu0 %v5045_v11 }
 0x536   : > { %v5047_v12 = vpop.xlane.xlu0 %5046 }
 0x537   : > { %v5048_v13 = vsub.f32 %v5040_v9, %v5047_v12 }
 0x539   : > { %v5049_v14 = vmul.f32 1.442695, %v5048_v13 }
 0x53b   : > { %9936 = vpow2.f32 %v5049_v14 }
 0x545   : > { %v9937_v15 = vpop.eup %9936 }
 0x546   : > { %v5051_v16 = vsel %vm5044_vm8, %v9937_v15, 0.0 }
 0x547   : > { %5052 = vadd.xlane.f32.xlu0 %v5051_v16 }
 0x5d4   : > { %v5053_v17 = vpop.xlane.xlu0 %5052 }
 0x5d5   : > { %9938 = vlog2.f32 %v5053_v17 }
 0x5df   : > { %v9939_v19 = vpop.eup %9938 }
 0x5e0   : > { %v5055_v20 = vmul.f32 0.6931472, %v9939_v19 }
 0x5e2   : > { %v5056_v21 = vsub.f32 %v5048_v13, %v5055_v20 }
 0x5e4   : > { %5057 = vst.msk [vmem:[#allocation3] sm:$0x3] %vm5044_vm8, %v5056_v21 }
 0x5e5 PF: > { %p9903_p7 = scmp.eq.s32.totalorder %s10016_s16, 1  ;;  %s9984_s27 = smov [#allocation3]  }
 0x5e6   : > { %s5065_s28 = sshll.u32 %s9984_s27, 4  ;;  %s5066_s28 = int_to_ptr.vmem [resolvable:$true] %s5065_s28 }
 0x5e7   : > { %s9940_s29 = scalar_lea.vmem %s5066_s28, 32  ;;  %p9947_p11 = scmp.lt.s32.totalorder %s5066_s28, %s5066_s28 }
 0x5e8   : > { %p9941_p8 = scmp.ne.s32.totalorder %s5066_s28, %s9940_s29  ;;  %p9948_p12 = scmp.lt.s32.totalorder %s9940_s29, %s9940_s29 }
 0x5ea   : > { %p9942_p9 = pnand %p9941_p8, %p9903_p7  ;;  %p9949_p13 = por %p9948_p12, %p9947_p11 }
 0x5ec   : > { %p9943_p10 = pneg %p9942_p9 }
 0x5ee   : > { %p9950_p0 = pnand %p9949_p13, %p9943_p10 }
 0x5f0   : > { %9953 = shalt.err (!%p9950_p0)
}
 0x5f1   : > { %s9954_s6 = scalar_lea.hbm %s10839_s4, 32 }
 0x5f2   : > { %p9955_p1 = scmp.ne.s32.totalorder %s10839_s4, %s9954_s6  ;;  %p9960_p4 = scmp.lt.u32.totalorder %s9954_s6, %s10839_s4 }
 0x5f4   : > { %p9956_p2 = pnand %p9955_p1, %p9903_p7 }
 0x5f6   : > { %p9957_p3 = pneg %p9956_p2 }
 0x5f8   : > { %p9962_p5 = pnand %p9960_p4, %p9957_p3 }
 0x5fa   : > { %9965 = shalt.err (!%p9962_p5)
}
 0x5fb   : > { %9900 = dma.vmem_to_hbm [thread:$0]  (%p9903_p7), %s5066_s28, 32, %s10839_s4, [#allocation4]  }
 0x5fc   : > { %9971 = dma.done.wait (%p9903_p7), [#allocation4], 32  }
 0x5fd   : > { %9973 = vsyncadd (%p9903_p7), [#allocation4], 4294967264 }
 0x5fe PF: > { %s15_s15 = sadd.s32 1, %s9976_s15  }
 0x5ff   : > { %p12_p6 = scmp.ge.s32.totalorder %s15_s15, 4  }
 0x601   :  { %14 = sbr.rel (!%p12_p6) target bundleno = 1 (0x1), region = 74 }
 0x608   :  { %5078 = vsyncpa [#allocation4], 1 }
 0x609   :  { %5080 = vsyncpa [#allocation4 + $0x1], 1 }

</bundles_post_ra>
